<compile_context>
chip_gen: v7x
topology: tpu7x:2x2x1
jax: 0.10.0
libtpu: 0.0.40
codegen_flags: <defaults>
</compile_context>

<pallas_src>
import functools

import jax
import jax.numpy as jnp
from jax.experimental import pallas as pl
from jax.experimental.pallas import tpu as pltpu

LANE = 128  # TPU lane width; only weight N/K axes are padded to this


def _round_up(x, m):
    return (x + m - 1) // m * m


# ----------------------------- fused kernel ----------------------------------


def _resblock_kernel(*refs, taps1, id_view, out_hw, cin, has_down):
    """Fully fused ResBlock for one batch element.

    refs = (xp, w1, s1, w2, s2, [wd, sd], out, hpad_scratch)
      xp   : (1, n_par*Hs, Ws, Cin) bf16  spatially padded, parity-folded input
      w1   : (9*Cin, Cp)            bf16  BN1-scale-folded conv1 weights (tap-major K)
      s1   : (1, Cp)                f32   BN1 shift (+conv1 bias)
      w2   : (9*Cp, Cp)             bf16  BN2-scale-folded conv2 weights
      s2   : (1, Cp)                f32
      wd   : (Cin, Cp)              bf16  downsample 1x1 weights (optional)
      sd   : (1, Cp)                f32
      out  : (1, Hout*Wout, Cp)     f32
      hpad : (Hout+2, Wout+2, Cp)   bf16  VMEM scratch: conv2 input with halo=1
    """
    if has_down:
        xp_ref, w1_ref, s1_ref, w2_ref, s2_ref, wd_ref, sd_ref, o_ref, hpad_ref = refs
    else:
        xp_ref, w1_ref, s1_ref, w2_ref, s2_ref, o_ref, hpad_ref = refs

    Hout, Wout = out_hw
    m = Hout * Wout
    cp = o_ref.shape[-1]

    xp = xp_ref[0]                                        # (n_par*Hs, Ws, Cin) bf16

    # ---- conv1 (+folded BN1 scale) as ONE long-K matmul over the 9 taps -----
    views1 = [xp[r0:r0 + Hout, c0:c0 + Wout, :] for (r0, c0) in taps1]
    lhs1 = jnp.concatenate(views1, axis=-1).reshape(m, 9 * cin)
    h = jnp.dot(lhs1, w1_ref[...], preferred_element_type=jnp.float32)
    h = jnp.maximum(h + s1_ref[...], 0.0)                 # BN1 shift + ReLU, (m, Cp)

    # ---- stage h in VMEM with a zero halo; it never round-trips HBM ---------
    hpad_ref[...] = jnp.zeros_like(hpad_ref)
    hpad_ref[1:1 + Hout, 1:1 + Wout, :] = (
        h.reshape(Hout, Wout, cp).astype(hpad_ref.dtype))

    # ---- conv2 (+folded BN2 scale) as ONE long-K matmul ----------------------
    views2 = [hpad_ref[kh:kh + Hout, kw:kw + Wout, :]
              for kh in range(3) for kw in range(3)]
    lhs2 = jnp.concatenate(views2, axis=-1).reshape(m, 9 * cp)
    y = jnp.dot(lhs2, w2_ref[...], preferred_element_type=jnp.float32) + s2_ref[...]

    # ---- identity path: 1x1-stride2 conv + BN, or the raw input -------------
    r0, c0 = id_view
    idv = xp[r0:r0 + Hout, c0:c0 + Wout, :].reshape(m, cin)
    if has_down:
        ident = jnp.dot(idv, wd_ref[...],
                        preferred_element_type=jnp.float32) + sd_ref[...]
    else:
        ident = jnp.pad(idv.astype(jnp.float32), ((0, 0), (0, cp - cin)))

    o_ref[0] = jnp.maximum(y + ident, 0.0).astype(o_ref.dtype)


# --------------------------- parameter folding --------------------------------


def _fold_bn(w, b, gamma, beta, mean, var, eps=1e-5):
    """Fold BN running stats (+conv bias) into scaled weights + a shift."""
    scale = gamma / jnp.sqrt(var + eps)                           # (Cout,)
    shift = beta + (b - mean) * scale                             # (Cout,)
    wt = jnp.transpose(w * scale[:, None, None, None], (2, 3, 1, 0))  # (Kh,Kw,Cin,Cout)
    return wt, shift


# ------------------------------- forward --------------------------------------


def resblock_forward(x_nchw, p, *, stride):
    """BadNet ResBlock forward (inference-mode BN). NCHW in/out like PyTorch."""
    out_c, in_c = p["w1"].shape[0], p["w1"].shape[1]
    has_down = in_c != out_c
    N, _, H, W = x_nchw.shape
    s = stride

    Hout = (H + 2 - 3) // s + 1
    Wout = (W + 2 - 3) // s + 1
    if has_down:
        # Reference module hard-codes the 1x1 downsample at stride 2.
        Hd, Wd = (H - 1) // 2 + 1, (W - 1) // 2 + 1
        assert (Hd, Wd) == (Hout, Wout), "config would also mismatch in PyTorch"
    else:
        assert s == 1, "identity add requires stride 1 when in_c == out_c"

    cp = _round_up(out_c, LANE)                     # lane-dense output channels

    # NCHW -> NHWC, ONE combined pad (conv padding=1 + stride alignment), then
    # the stride-parity split as a single reshape/transpose (no extra passes).
    x = jnp.transpose(x_nchw, (0, 2, 3, 1)).astype(jnp.bfloat16)
    Hp0, Wp0 = H + 2, W + 2
    Hs, Ws = pl.cdiv(Hp0, s), pl.cdiv(Wp0, s)
    xpad = jnp.pad(x, ((0, 0), (1, 1 + Hs * s - Hp0),
                       (1, 1 + Ws * s - Wp0), (0, 0)))
    if s > 1:
        xp = xpad.reshape(N, Hs, s, Ws, s, in_c).transpose(0, 2, 4, 1, 3, 5)
        xp = xp.reshape(N, s * s * Hs, Ws, in_c)
    else:
        xp = xpad                                   # (N, Hs, Ws, Cin)
    n_rows = xp.shape[1]

    # Per-tap (row, col) offsets inside the parity-folded slab array.
    taps1 = tuple(
        (((kh % s) * s + (kw % s)) * Hs + kh // s, kw // s)
        for kh in range(3) for kw in range(3))
    if has_down:
        id_view = (((1 % s) * s + (1 % s)) * Hs, 0)  # x[2*oh, 2*ow] window
    else:
        id_view = (1, 1)                             # x[oh, ow] window

    # Fold BN into weights / shifts; pad only weight K/N axes (not activations).
    wt1, sh1 = _fold_bn(p["w1"], p["b1"], p["g1"], p["beta1"], p["m1"], p["v1"])
    w1 = jnp.pad(wt1.reshape(9 * in_c, out_c),
                 ((0, 0), (0, cp - out_c))).astype(jnp.bfloat16)
    s1 = jnp.pad(sh1.reshape(1, out_c), ((0, 0), (0, cp - out_c))).astype(jnp.float32)

    wt2, sh2 = _fold_bn(p["w2"], p["b2"], p["g2"], p["beta2"], p["m2"], p["v2"])
    w2 = jnp.pad(wt2, ((0, 0), (0, 0), (0, cp - out_c), (0, cp - out_c)))
    w2 = w2.reshape(9 * cp, cp).astype(jnp.bfloat16)
    s2 = jnp.pad(sh2.reshape(1, out_c), ((0, 0), (0, cp - out_c))).astype(jnp.float32)

    args = [xp, w1, s1, w2, s2]
    in_specs = [
        pl.BlockSpec((1, n_rows, Ws, in_c), lambda n: (n, 0, 0, 0)),
        pl.BlockSpec((9 * in_c, cp), lambda n: (0, 0)),
        pl.BlockSpec((1, cp), lambda n: (0, 0)),
        pl.BlockSpec((9 * cp, cp), lambda n: (0, 0)),
        pl.BlockSpec((1, cp), lambda n: (0, 0)),
    ]
    if has_down:
        wtd, shd = _fold_bn(p["wd"], p["bd"], p["gd"], p["betad"], p["md"], p["vd"])
        wd = jnp.pad(wtd.reshape(in_c, out_c),
                     ((0, 0), (0, cp - out_c))).astype(jnp.bfloat16)
        sd = jnp.pad(shd.reshape(1, out_c),
                     ((0, 0), (0, cp - out_c))).astype(jnp.float32)
        args += [wd, sd]
        in_specs += [pl.BlockSpec((in_c, cp), lambda n: (0, 0)),
                     pl.BlockSpec((1, cp), lambda n: (0, 0))]

    m = Hout * Wout
    kernel = functools.partial(
        _resblock_kernel, taps1=taps1, id_view=id_view, out_hw=(Hout, Wout),
        cin=in_c, has_down=has_down)

    out = pl.pallas_call(
        kernel,
        grid=(N,),
        in_specs=in_specs,
        out_specs=pl.BlockSpec((1, m, cp), lambda n: (n, 0, 0)),
        out_shape=jax.ShapeDtypeStruct((N, m, cp), jnp.float32),
        scratch_shapes=[pltpu.VMEM((Hout + 2, Wout + 2, cp), jnp.bfloat16)],
        compiler_params=pltpu.CompilerParams(
            dimension_semantics=("parallel",)),
    )(*args)

    out = out.reshape(N, Hout, Wout, cp)[..., :out_c]    # drop channel pad
    return jnp.transpose(out, (0, 3, 1, 2))              # NHWC -> NCHW


# --------------------------- pure-JAX reference --------------------------------


def resblock_reference(x, p, *, stride):
    def conv(x, w, b, s, pad):
        y = jax.lax.conv_general_dilated(
            x, w, window_strides=(s, s), padding=((pad, pad), (pad, pad)),
            dimension_numbers=("NCHW", "OIHW", "NCHW"))
        return y + b[None, :, None, None]

    def bn(x, g, beta, m, v, eps=1e-5):
        inv = g / jnp.sqrt(v + eps)
        return x * inv[None, :, None, None] + (beta - m * g / jnp.sqrt(v + eps))[None, :, None, None]

    out_c, in_c = p["w1"].shape[0], p["w1"].shape[1]
    out = jax.nn.relu(bn(conv(x, p["w1"], p["b1"], stride, 1),
                         p["g1"], p["beta1"], p["m1"], p["v1"]))
    out = bn(conv(out, p["w2"], p["b2"], 1, 1),
             p["g2"], p["beta2"], p["m2"], p["v2"])
    if in_c != out_c:
        identity = bn(conv(x, p["wd"], p["bd"], 2, 0),
                      p["gd"], p["betad"], p["md"], p["vd"])
    else:
        identity = x
    return jax.nn.relu(out + identity)


# ------------------------------ parameters ------------------------------------


def init_params(key, in_c, out_c):
    ks = jax.random.split(key, 24)

    def nrm(k, shape, s=0.1):
        return s * jax.random.normal(k, shape, jnp.float32)

    def pos(k, shape):
        return jnp.abs(jax.random.normal(k, shape, jnp.float32)) + 0.5

    return {
        "w1": nrm(ks[0], (out_c, in_c, 3, 3)), "b1": nrm(ks[1], (out_c,)),
        "g1": 1.0 + nrm(ks[2], (out_c,)), "beta1": nrm(ks[3], (out_c,)),
        "m1": nrm(ks[4], (out_c,)), "v1": pos(ks[5], (out_c,)),
        "w2": nrm(ks[6], (out_c, out_c, 3, 3)), "b2": nrm(ks[7], (out_c,)),
        "g2": 1.0 + nrm(ks[8], (out_c,)), "beta2": nrm(ks[9], (out_c,)),
        "m2": nrm(ks[10], (out_c,)), "v2": pos(ks[11], (out_c,)),
        "wd": nrm(ks[12], (out_c, in_c, 1, 1)), "bd": nrm(ks[13], (out_c,)),
        "gd": 1.0 + nrm(ks[14], (out_c,)), "betad": nrm(ks[15], (out_c,)),
        "md": nrm(ks[16], (out_c,)), "vd": pos(ks[17], (out_c,)),
    }


if __name__ == "__main__":
    key = jax.random.PRNGKey(0)
    k_param, k_x = jax.random.split(key)

    in_c, out_c, stride = 4, 8, 2
    N, H, W = 2, 16, 16

    params = init_params(k_param, in_c, out_c)
    x = jax.random.normal(k_x, (N, in_c, H, W), jnp.float32)   # NCHW like PyTorch

    fwd = jax.jit(functools.partial(resblock_forward, stride=stride))
    out = jax.block_until_ready(fwd(x, params))

    assert out.shape == (N, out_c, H // stride, W // stride), out.shape
    assert bool(jnp.all(out >= 0.0))                            # final ReLU

    ref = resblock_reference(x, params, stride=stride)
    tol = 5e-2 + 5e-2 * float(jnp.max(jnp.abs(ref)))            # bf16 tolerance
    err = float(jnp.max(jnp.abs(out - ref)))
    assert err < tol, (err, tol)

    print("KERNEL_OK")
</pallas_src>

<mosaic_0001>
module attributes {stable_mosaic.version = 11 : i64} {
  func.func @_resblock_kernel(%arg0: i32, %arg1: memref<1x36x9x4xbf16, #tpu.memory_space<vmem>>, %arg2: memref<36x128xbf16, #tpu.memory_space<vmem>>, %arg3: memref<1x128xf32, #tpu.memory_space<vmem>>, %arg4: memref<1152x128xbf16, #tpu.memory_space<vmem>>, %arg5: memref<1x128xf32, #tpu.memory_space<vmem>>, %arg6: memref<4x128xbf16, #tpu.memory_space<vmem>>, %arg7: memref<1x128xf32, #tpu.memory_space<vmem>>, %arg8: memref<1x64x128xf32, #tpu.memory_space<vmem>>, %arg9: memref<10x10x128xbf16, #tpu.memory_space<vmem>>) attributes {dimension_semantics = [#tpu.dimension_semantics<parallel>], iteration_bounds = array<i64: 2>, scalar_prefetch = 0 : i64, scratch_operands = 1 : i64, tpu.core_type = #tpu.core_type<tc>, window_params = [{transform_indices = @transform_0, window_bounds = array<i64: 1, 36, 9, 4>}, {pipeline_mode = #tpu.pipeline_mode<synchronous>, transform_indices = @transform_1, window_bounds = array<i64: 36, 128>}, {pipeline_mode = #tpu.pipeline_mode<synchronous>, transform_indices = @transform_2, window_bounds = array<i64: 1, 128>}, {pipeline_mode = #tpu.pipeline_mode<synchronous>, transform_indices = @transform_3, window_bounds = array<i64: 1152, 128>}, {pipeline_mode = #tpu.pipeline_mode<synchronous>, transform_indices = @transform_4, window_bounds = array<i64: 1, 128>}, {pipeline_mode = #tpu.pipeline_mode<synchronous>, transform_indices = @transform_5, window_bounds = array<i64: 4, 128>}, {pipeline_mode = #tpu.pipeline_mode<synchronous>, transform_indices = @transform_6, window_bounds = array<i64: 1, 128>}, {transform_indices = @transform_7, window_bounds = array<i64: 1, 64, 128>}]} {
    %c0 = arith.constant 0 : index
    %c0_0 = arith.constant 0 : index
    %c0_1 = arith.constant 0 : index
    %c0_2 = arith.constant 0 : index
    %0 = vector.load %arg1[%c0, %c0_0, %c0_1, %c0_2] : memref<1x36x9x4xbf16, #tpu.memory_space<vmem>>, vector<1x36x9x4xbf16>
    %1 = vector.shape_cast %0 : vector<1x36x9x4xbf16> to vector<36x9x4xbf16>
    %2 = vector.extract_strided_slice %1 {offsets = [0, 0, 0], sizes = [8, 8, 4], strides = [1, 1, 1]} : vector<36x9x4xbf16> to vector<8x8x4xbf16>
    %3 = vector.extract_strided_slice %1 {offsets = [9, 0, 0], sizes = [8, 8, 4], strides = [1, 1, 1]} : vector<36x9x4xbf16> to vector<8x8x4xbf16>
    %4 = vector.extract_strided_slice %1 {offsets = [0, 1, 0], sizes = [8, 8, 4], strides = [1, 1, 1]} : vector<36x9x4xbf16> to vector<8x8x4xbf16>
    %5 = vector.extract_strided_slice %1 {offsets = [18, 0, 0], sizes = [8, 8, 4], strides = [1, 1, 1]} : vector<36x9x4xbf16> to vector<8x8x4xbf16>
    %6 = vector.extract_strided_slice %1 {offsets = [27, 0, 0], sizes = [8, 8, 4], strides = [1, 1, 1]} : vector<36x9x4xbf16> to vector<8x8x4xbf16>
    %7 = vector.extract_strided_slice %1 {offsets = [18, 1, 0], sizes = [8, 8, 4], strides = [1, 1, 1]} : vector<36x9x4xbf16> to vector<8x8x4xbf16>
    %8 = vector.extract_strided_slice %1 {offsets = [1, 0, 0], sizes = [8, 8, 4], strides = [1, 1, 1]} : vector<36x9x4xbf16> to vector<8x8x4xbf16>
    %9 = vector.extract_strided_slice %1 {offsets = [10, 0, 0], sizes = [8, 8, 4], strides = [1, 1, 1]} : vector<36x9x4xbf16> to vector<8x8x4xbf16>
    %10 = vector.extract_strided_slice %1 {offsets = [1, 1, 0], sizes = [8, 8, 4], strides = [1, 1, 1]} : vector<36x9x4xbf16> to vector<8x8x4xbf16>
    %11 = tpu.concatenate %2, %3, %4, %5, %6, %7, %8, %9, %10 in 2 : vector<8x8x4xbf16>, vector<8x8x4xbf16>, vector<8x8x4xbf16>, vector<8x8x4xbf16>, vector<8x8x4xbf16>, vector<8x8x4xbf16>, vector<8x8x4xbf16>, vector<8x8x4xbf16>, vector<8x8x4xbf16> -> vector<8x8x36xbf16>
    %12 = vector.shape_cast %11 : vector<8x8x36xbf16> to vector<64x36xbf16>
    %c0_3 = arith.constant 0 : index
    %c0_4 = arith.constant 0 : index
    %13 = vector.load %arg2[%c0_3, %c0_4] : memref<36x128xbf16, #tpu.memory_space<vmem>>, vector<36x128xbf16>
    %cst = arith.constant dense<0.000000e+00> : vector<64x128xf32>
    %14 = tpu.matmul %12, %13, %cst {dimension_numbers = #tpu.dot_dimension_numbers<[1], [0], [0], [1], [0, 0, 1, 1], [], []>} : vector<64x36xbf16>, vector<36x128xbf16>, vector<64x128xf32> -> vector<64x128xf32>
    %c0_5 = arith.constant 0 : index
    %c0_6 = arith.constant 0 : index
    %15 = vector.load %arg3[%c0_5, %c0_6] : memref<1x128xf32, #tpu.memory_space<vmem>>, vector<1x128xf32>
    %16 = vector.broadcast %15 : vector<1x128xf32> to vector<64x128xf32>
    %17 = arith.addf %14, %16 : vector<64x128xf32>
    %cst_7 = arith.constant 0.000000e+00 : f32
    %18 = vector.broadcast %cst_7 : f32 to vector<64x128xf32>
    %19 = arith.maximumf %17, %18 : vector<64x128xf32>
    %cst_8 = arith.constant 0.000000e+00 : bf16
    %20 = vector.broadcast %cst_8 : bf16 to vector<10x10x128xbf16>
    %c0_9 = arith.constant 0 : index
    %c0_10 = arith.constant 0 : index
    %c0_11 = arith.constant 0 : index
    %21 = vector.load %arg9[%c0_9, %c0_10, %c0_11] : memref<10x10x128xbf16, #tpu.memory_space<vmem>>, vector<10x10x128xbf16>
    tpu.vector_store %arg9[%c0_9, %c0_10, %c0_11], %20 {strides = array<i32>} : memref<10x10x128xbf16, #tpu.memory_space<vmem>>, vector<10x10x128xbf16>,
    %22 = vector.shape_cast %19 : vector<64x128xf32> to vector<8x8x128xf32>
    %23 = arith.truncf %22 : vector<8x8x128xf32> to vector<8x8x128xbf16>
    %c1 = arith.constant 1 : index
    %c1_12 = arith.constant 1 : index
    %c0_13 = arith.constant 0 : index
    %24 = vector.load %arg9[%c1, %c1_12, %c0_13] : memref<10x10x128xbf16, #tpu.memory_space<vmem>>, vector<8x8x128xbf16>
    tpu.vector_store %arg9[%c1, %c1_12, %c0_13], %23 {strides = array<i32>} : memref<10x10x128xbf16, #tpu.memory_space<vmem>>, vector<8x8x128xbf16>,
    %c0_14 = arith.constant 0 : index
    %c0_15 = arith.constant 0 : index
    %c0_16 = arith.constant 0 : index
    %25 = vector.load %arg9[%c0_14, %c0_15, %c0_16] : memref<10x10x128xbf16, #tpu.memory_space<vmem>>, vector<8x8x128xbf16>
    %c0_17 = arith.constant 0 : index
    %c1_18 = arith.constant 1 : index
    %c0_19 = arith.constant 0 : index
    %26 = vector.load %arg9[%c0_17, %c1_18, %c0_19] : memref<10x10x128xbf16, #tpu.memory_space<vmem>>, vector<8x8x128xbf16>
    %c0_20 = arith.constant 0 : index
    %c2 = arith.constant 2 : index
    %c0_21 = arith.constant 0 : index
    %27 = vector.load %arg9[%c0_20, %c2, %c0_21] : memref<10x10x128xbf16, #tpu.memory_space<vmem>>, vector<8x8x128xbf16>
    %c1_22 = arith.constant 1 : index
    %c0_23 = arith.constant 0 : index
    %c0_24 = arith.constant 0 : index
    %28 = vector.load %arg9[%c1_22, %c0_23, %c0_24] : memref<10x10x128xbf16, #tpu.memory_space<vmem>>, vector<8x8x128xbf16>
    %c1_25 = arith.constant 1 : index
    %c1_26 = arith.constant 1 : index
    %c0_27 = arith.constant 0 : index
    %29 = vector.load %arg9[%c1_25, %c1_26, %c0_27] : memref<10x10x128xbf16, #tpu.memory_space<vmem>>, vector<8x8x128xbf16>
    %c1_28 = arith.constant 1 : index
    %c2_29 = arith.constant 2 : index
    %c0_30 = arith.constant 0 : index
    %30 = vector.load %arg9[%c1_28, %c2_29, %c0_30] : memref<10x10x128xbf16, #tpu.memory_space<vmem>>, vector<8x8x128xbf16>
    %c2_31 = arith.constant 2 : index
    %c0_32 = arith.constant 0 : index
    %c0_33 = arith.constant 0 : index
    %31 = vector.load %arg9[%c2_31, %c0_32, %c0_33] : memref<10x10x128xbf16, #tpu.memory_space<vmem>>, vector<8x8x128xbf16>
    %c2_34 = arith.constant 2 : index
    %c1_35 = arith.constant 1 : index
    %c0_36 = arith.constant 0 : index
    %32 = vector.load %arg9[%c2_34, %c1_35, %c0_36] : memref<10x10x128xbf16, #tpu.memory_space<vmem>>, vector<8x8x128xbf16>
    %c2_37 = arith.constant 2 : index
    %c2_38 = arith.constant 2 : index
    %c0_39 = arith.constant 0 : index
    %33 = vector.load %arg9[%c2_37, %c2_38, %c0_39] : memref<10x10x128xbf16, #tpu.memory_space<vmem>>, vector<8x8x128xbf16>
    %34 = tpu.concatenate %25, %26, %27, %28, %29, %30, %31, %32, %33 in 2 : vector<8x8x128xbf16>, vector<8x8x128xbf16>, vector<8x8x128xbf16>, vector<8x8x128xbf16>, vector<8x8x128xbf16>, vector<8x8x128xbf16>, vector<8x8x128xbf16>, vector<8x8x128xbf16>, vector<8x8x128xbf16> -> vector<8x8x1152xbf16>
    %35 = vector.shape_cast %34 : vector<8x8x1152xbf16> to vector<64x1152xbf16>
    %c0_40 = arith.constant 0 : index
    %c0_41 = arith.constant 0 : index
    %36 = vector.load %arg4[%c0_40, %c0_41] : memref<1152x128xbf16, #tpu.memory_space<vmem>>, vector<1152x128xbf16>
    %cst_42 = arith.constant dense<0.000000e+00> : vector<64x128xf32>
    %37 = tpu.matmul %35, %36, %cst_42 {dimension_numbers = #tpu.dot_dimension_numbers<[1], [0], [0], [1], [0, 0, 1, 1], [], []>} : vector<64x1152xbf16>, vector<1152x128xbf16>, vector<64x128xf32> -> vector<64x128xf32>
    %c0_43 = arith.constant 0 : index
    %c0_44 = arith.constant 0 : index
    %38 = vector.load %arg5[%c0_43, %c0_44] : memref<1x128xf32, #tpu.memory_space<vmem>>, vector<1x128xf32>
    %39 = vector.broadcast %38 : vector<1x128xf32> to vector<64x128xf32>
    %40 = arith.addf %37, %39 : vector<64x128xf32>
    %41 = vector.extract_strided_slice %1 {offsets = [27, 0, 0], sizes = [8, 8, 4], strides = [1, 1, 1]} : vector<36x9x4xbf16> to vector<8x8x4xbf16>
    %42 = vector.shape_cast %41 : vector<8x8x4xbf16> to vector<64x4xbf16>
    %c0_45 = arith.constant 0 : index
    %c0_46 = arith.constant 0 : index
    %43 = vector.load %arg6[%c0_45, %c0_46] : memref<4x128xbf16, #tpu.memory_space<vmem>>, vector<4x128xbf16>
    %cst_47 = arith.constant dense<0.000000e+00> : vector<64x128xf32>
    %44 = tpu.matmul %42, %43, %cst_47 {dimension_numbers = #tpu.dot_dimension_numbers<[1], [0], [0], [1], [0, 0, 1, 1], [], []>} : vector<64x4xbf16>, vector<4x128xbf16>, vector<64x128xf32> -> vector<64x128xf32>
    %c0_48 = arith.constant 0 : index
    %c0_49 = arith.constant 0 : index
    %45 = vector.load %arg7[%c0_48, %c0_49] : memref<1x128xf32, #tpu.memory_space<vmem>>, vector<1x128xf32>
    %46 = vector.broadcast %45 : vector<1x128xf32> to vector<64x128xf32>
    %47 = arith.addf %44, %46 : vector<64x128xf32>
    %48 = arith.addf %40, %47 : vector<64x128xf32>
    %cst_50 = arith.constant 0.000000e+00 : f32
    %49 = vector.broadcast %cst_50 : f32 to vector<64x128xf32>
    %50 = arith.maximumf %48, %49 : vector<64x128xf32>
    %c0_51 = arith.constant 0 : index
    %c0_52 = arith.constant 0 : index
    %c0_53 = arith.constant 0 : index
    %51 = vector.load %arg8[%c0_51, %c0_52, %c0_53] : memref<1x64x128xf32, #tpu.memory_space<vmem>>, vector<1x64x128xf32>
    %52 = vector.shape_cast %51 : vector<1x64x128xf32> to vector<64x128xf32>
    %53 = vector.shape_cast %50 : vector<64x128xf32> to vector<1x64x128xf32>
    tpu.vector_store %arg8[%c0_51, %c0_52, %c0_53], %53 {strides = array<i32>} : memref<1x64x128xf32, #tpu.memory_space<vmem>>, vector<1x64x128xf32>,
    return
  }
  func.func @transform_0(%arg0: i32) -> (i32, i32, i32, i32) {
    %c0_i32 = arith.constant 0 : i32
    %c0_i32_0 = arith.constant 0 : i32
    %c0_i32_1 = arith.constant 0 : i32
    %c0_i32_2 = arith.constant 0 : i32
    return %arg0, %c0_i32, %c0_i32_0, %c0_i32_1 : i32, i32, i32, i32
  }
  func.func @transform_1(%arg0: i32) -> (i32, i32) {
    %c0_i32 = arith.constant 0 : i32
    %c0_i32_0 = arith.constant 0 : i32
    %c0_i32_1 = arith.constant 0 : i32
    return %c0_i32, %c0_i32_0 : i32, i32
  }
  func.func @transform_2(%arg0: i32) -> (i32, i32) {
    %c0_i32 = arith.constant 0 : i32
    %c0_i32_0 = arith.constant 0 : i32
    %c0_i32_1 = arith.constant 0 : i32
    return %c0_i32, %c0_i32_0 : i32, i32
  }
  func.func @transform_3(%arg0: i32) -> (i32, i32) {
    %c0_i32 = arith.constant 0 : i32
    %c0_i32_0 = arith.constant 0 : i32
    %c0_i32_1 = arith.constant 0 : i32
    return %c0_i32, %c0_i32_0 : i32, i32
  }
  func.func @transform_4(%arg0: i32) -> (i32, i32) {
    %c0_i32 = arith.constant 0 : i32
    %c0_i32_0 = arith.constant 0 : i32
    %c0_i32_1 = arith.constant 0 : i32
    return %c0_i32, %c0_i32_0 : i32, i32
  }
  func.func @transform_5(%arg0: i32) -> (i32, i32) {
    %c0_i32 = arith.constant 0 : i32
    %c0_i32_0 = arith.constant 0 : i32
    %c0_i32_1 = arith.constant 0 : i32
    return %c0_i32, %c0_i32_0 : i32, i32
  }
  func.func @transform_6(%arg0: i32) -> (i32, i32) {
    %c0_i32 = arith.constant 0 : i32
    %c0_i32_0 = arith.constant 0 : i32
    %c0_i32_1 = arith.constant 0 : i32
    return %c0_i32, %c0_i32_0 : i32, i32
  }
  func.func @transform_7(%arg0: i32) -> (i32, i32, i32) {
    %c0_i32 = arith.constant 0 : i32
    %c0_i32_0 = arith.constant 0 : i32
    %c0_i32_1 = arith.constant 0 : i32
    return %arg0, %c0_i32, %c0_i32_0 : i32, i32, i32
  }
}

</mosaic_0001>

<bundles_post_ra>
// kernel: resblock_forward.1
= control target key start
LH: loop header
LB: loop body
LE: loop exit
PB: predicated region body
PF: predicated region fallthrough
CT: control target
= control target key end

     0   :  { %s3647_s24 = smov 0   ;;  %s4477_s0 = inlined_call_operand.vmem [shape: bf16[2,36,9,4], index: 0, kind: input, shape index: {}]   ;;  %s4478_s1 = inlined_call_operand.vmem [shape: bf16[36,128], index: 1, kind: input, shape index: {}]   ;;  %s4479_s2 = inlined_call_operand.vmem [shape: f32[1,128], index: 2, kind: input, shape index: {}]   ;;  %s4480_s3 = inlined_call_operand.vmem [shape: bf16[1152,128], index: 3, kind: input, shape index: {}]   ;;  %s4481_s4 = inlined_call_operand.vmem [shape: f32[1,128], index: 4, kind: input, shape index: {}]   ;;  %s4482_s5 = inlined_call_operand.vmem [shape: bf16[4,128], index: 5, kind: input, shape index: {}]   ;;  %s4483_s6 = inlined_call_operand.vmem [shape: f32[1,128], index: 6, kind: input, shape index: {}]   ;;  %s4484_s7 = inlined_call_operand.vmem [shape: f32[2,64,128], index: 7, kind: output, shape index: {}]  }
   0x1 LB: > { %s2854_s25 = sadd.s32 4294967295, %s3596_s24   ;;  %p2858_p0 = scmp.ge.s32.totalorder %s3596_s24, 1  ;;  %s3596_s24 = sphi %s3647_s24, %s17_s24  }
   0x2   : > { %p237_p1 = scmp.lt.s32.totalorder %s3596_s24, 3 }
   0x4   : > { %p238_p2 = pnand %p2858_p0, %p237_p1 }
   0x5   : > { %p269_p3 = scmp.lt.s32.totalorder (!%p238_p2), %s2854_s25, 1  ;;  %s3598_s30 = smov (!%p238_p2), 4   ;;  %vm934_vm0 = vcmask (!%p238_p2), 1041408   ;;  %vm730_vm1 = vcmask (!%p238_p2), 31744   ;;  %vm755_vm2 = vcmask (!%p238_p2), 64512   ;;  %vm772_vm3 = vcmask (!%p238_p2), 97280  }
   0x6   : > { %241 = sbr.rel (%p238_p2) target bundleno = 790 (0x316), region = 48  ;;  %s3599_s8 = smov (!%p238_p2), 12   ;;  %vm789_vm4 = vcmask (!%p238_p2), 130048   ;;  %vm806_vm5 = vcmask (!%p238_p2), 162816   ;;  %vm823_vm6 = vcmask (!%p238_p2), 195584   ;;  %vm840_vm7 = vcmask (!%p238_p2), 228352  }
   0x7   : > { %s3600_s9 = smov (!%p238_p2), 8   ;;  %s3601_s10 = smov (!%p238_p2), 16   ;;  %vm857_vm8 = vcmask (!%p238_p2), 261120   ;;  %vm921_vm9 = vcmask (!%p238_p2), 293888   ;;  %vm1144_vm10 = vcmask (!%p238_p2), 1043456   ;;  %vm1150_vm12 = vcmask (!%p238_p2), 1040384  }
   0x8   : > { %s3602_s11 = smov (!%p238_p2), 20   ;;  %s3603_s14 = smov (!%p238_p2), 24   ;;  %vm1145_vm11 = vsmask.f32 (!%p238_p2), 7938  ;;  %vm1151_vm13 = vsmask.f32 (!%p238_p2), 256 }
   0x9   : > { %s3604_s19 = smov (!%p238_p2), 28   ;;  %s3605_s20 = smov (!%p238_p2), 32   ;;  %vm4114_vm14 = vmand (!%p238_p2), %vm1144_vm10, %vm1145_vm11 }
   0xa   : > { %vm4118_vm15 = vmand (!%p238_p2), %vm1150_vm12, %vm1151_vm13 }
   0xd   : > { %s4495_s25 = smov (!%p269_p3, %s2854_s25), 1 }
   0xe   : > { %s3383_s26 = smul.u32 288, %s4495_s25  ;;  %s3100_s28 = sshll.u32 %s4495_s25, 6 }
  0x10   : > { %s3661_s29 = scalar_lea.vmem %s4477_s0, %s3383_s26 }
  0x11   : > { %v3664_v0 = vld [vmem:[%s3661_s29 + $0x58] ss:$0 sps:$4 sm:$0xff]   ;;  %v3402_v1 = vld [vmem:[%s3661_s29 + $0x48] ss:$0 sps:$4 sm:$0xff]   ;;  %v3670_v2 = vld [vmem:[%s3661_s29 + $0x60] ss:$0 sps:$4 sm:$0xff]  }
  0x12   : > { %359 = vrot.lane.b32.xlu1 %v3664_v0, %s3598_s30  ;;  %355 = vrot.lane.b32.xlu0 %v3402_v1, %s3598_s30  ;;  %v3674_v3 = vld [vmem:[%s3661_s29 + $0x50] ss:$0 sps:$4 sm:$0xff]   ;;  %v309_v4 = vld [vmem:[%s3661_s29 + $0x98] sm:$0xf] }
  0x13   : > { %v307_v5 = vld [vmem:[%s3661_s29 + $0x90] sm:$0xf]  ;;  %v3679_v6 = vld [vmem:[%s3661_s29 + $0x8] sm:$0xf]  ;;  %v283_v7 = vld [vmem:[%s3661_s29 + $0xc] sm:$0x1]  ;;  %v2879_v13 = vcombine.low %v309_v4, %v309_v4 }
  0x14   : > { %v3683_v8 = vld [vmem:[%s3661_s29] sm:$0xf]  ;;  %v2871_v9 = vcombine.low %v3679_v6, %v283_v7  ;;  %v281_v10 = vld [vmem:[%s3661_s29 + $0x4] sm:$0x1]  ;;  %v3688_v11 = vld [vmem:[%s3661_s29 + $0x18] sm:$0xf]  ;;  %v2878_v18 = vcombine.low %v307_v5, %v307_v5 }
  0x15   : > { %v287_v12 = vld [vmem:[%s3661_s29 + $0x1c] sm:$0x1]  ;;  %v2870_v14 = vcombine.low %v3683_v8, %v281_v10  ;;  %v3696_v16 = vld [vmem:[%s3661_s29 + $0x10] sm:$0xf]  ;;  %v285_v17 = vld [vmem:[%s3661_s29 + $0x14] sm:$0x1] }
  0x16   : > { %361 = vrot.lane.b32.xlu1 %v3670_v2, %s3598_s30  ;;  %v2873_v15 = vcombine.low %v3688_v11, %v287_v12  ;;  %357 = vrot.lane.b32.xlu0 %v3674_v3, %s3598_s30  ;;  %v419_v19 = vshrl.u32 %v2871_v9, 16  ;;  %v421_v20 = vshll.u32 %v2871_v9, 16  ;;  %v2872_v21 = vcombine.low %v3696_v16, %v285_v17  ;;  %v3707_v33 = vld [vmem:[%s3661_s29 + $0xe0] sm:$0xf]  ;;  %v3710_v34 = vld [vmem:[%s3661_s29 + $0xd8] sm:$0xf] }
  0x17   : > { %v412_v22 = vshrl.u32 %v2870_v14, 16  ;;  %v414_v23 = vshll.u32 %v2870_v14, 16  ;;  %v3715_v37 = vld [vmem:[%s3661_s29 + $0xf0] sm:$0xf]  ;;  %v3718_v38 = vld [vmem:[%s3661_s29 + $0xe8] sm:$0xf]  ;;  %v2887_v56 = vcombine.low %v3707_v33, %v3707_v33  ;;  %v2886_v57 = vcombine.low %v3710_v34, %v3710_v34 }
  0x18   : > { %v435_v24 = vshll.u32 %v2873_v15, 16  ;;  %v423_v25 = vrot.slane %v421_v20, 1  ;;  %v428_v26 = vshll.u32 %v2872_v21, 16  ;;  %v433_v28 = vshrl.u32 %v2873_v15, 16  ;;  %v310_v39 = vld [vmem:[%s3661_s29 + $0x9c] sm:$0x1] }
  0x19   : > { %v416_v27 = vrot.slane %v414_v23, 1  ;;  %v426_v31 = vshrl.u32 %v2872_v21, 16  ;;  %v308_v40 = vld [vmem:[%s3661_s29 + $0x94] sm:$0x1]  ;;  %v313_v44 = vld [vmem:[%s3661_s29 + $0xa8] sm:$0xf]  ;;  %v2895_v46 = vcombine.low %v309_v4, %v310_v39  ;;  %v2889_v14 = vcombine.low %v3715_v37, %v3715_v37 }
  0x1a   : > { %509 = vrot.lane.b32.xlu1 %v2879_v13, %s3599_s8  ;;  %v437_v29 = vrot.slane %v435_v24, 1  ;;  %507 = vrot.lane.b32.xlu0 %v2878_v18, %s3599_s8  ;;  %v3704_v30 = vor.u32 %v423_v25, %v419_v19  ;;  %v430_v32 = vrot.slane %v428_v26, 1  ;;  %v314_v45 = vld [vmem:[%s3661_s29 + $0xac] sm:$0x1]  ;;  %v2894_v47 = vcombine.low %v307_v5, %v308_v40  ;;  %v311_v48 = vld [vmem:[%s3661_s29 + $0xa0] sm:$0xf] }
  0x1b   : > { %v417_v35 = vor.u32 %v416_v27, %v412_v22  ;;  %v312_v49 = vld [vmem:[%s3661_s29 + $0xa4] sm:$0x1]  ;;  %v2881_v50 = vcombine.low %v313_v44, %v313_v44  ;;  %v2897_v51 = vcombine.low %v313_v44, %v314_v45  ;;  %v2880_v52 = vcombine.low %v311_v48, %v311_v48  ;;  %v3747_v63 = vld [vmem:[%s3661_s29 + $0x20] sm:$0xf]  ;;  %v3750_v5 = vld [vmem:[%s3661_s29 + $0x28] sm:$0xf] }
  0x1c   : > { %v3726_v42 = vor.u32 %v437_v29, %v433_v28  ;;  %v3729_v43 = vor.u32 %v430_v32, %v426_v31  ;;  %v2896_v53 = vcombine.low %v311_v48, %v312_v49  ;;  %v597_v54 = vshll.u32 %v2895_v46, 16  ;;  %v289_v58 = vld [vmem:[%s3661_s29 + $0x24] sm:$0x1]  ;;  %v291_v7 = vld [vmem:[%s3661_s29 + $0x2c] sm:$0x1] }
  0x1d   : > { %v590_v55 = vshll.u32 %v2894_v47, 16  ;;  %v595_v59 = vshrl.u32 %v2895_v46, 16  ;;  %v588_v60 = vshrl.u32 %v2894_v47, 16  ;;  %v611_v61 = vshll.u32 %v2897_v51, 16  ;;  %v3757_v10 = vld [vmem:[%s3661_s29 + $0x38] sm:$0xf] }
  0x1e   : > { %469 = vrot.lane.b32.xlu1 %v3704_v30, %s3600_s9  ;;  %467 = vrot.lane.b32.xlu0 %v417_v35, %s3600_s9  ;;  %v604_v62 = vshll.u32 %v2896_v53, 16  ;;  %v599_v1 = vrot.slane %v597_v54, 1  ;;  %v3754_v9 = vcombine.low %v3747_v63, %v289_v58  ;;  %v3760_v12 = vld [vmem:[%s3661_s29 + $0x100] sm:$0xf]  ;;  %v3763_v13 = vld [vmem:[%s3661_s29 + $0xf8] sm:$0xf]  ;;  %v2888_v19 = vcombine.low %v3718_v38, %v3718_v38 }
  0x1f   : > { %v592_v4 = vrot.slane %v590_v55, 1  ;;  %v3771_v17 = vld [vmem:[%s3661_s29 + $0x110] sm:$0xf]  ;;  %v3774_v18 = vld [vmem:[%s3661_s29 + $0x108] sm:$0xf]  ;;  %v609_v22 = vshrl.u32 %v2897_v51, 16  ;;  %v3784_v25 = vcombine.low %v3750_v5, %v291_v7  ;;  %v2903_v51 = vcombine.low %v3696_v16, %v3696_v16 }
  0x20   : > { %v295_v20 = vld [vmem:[%s3661_s29 + $0x3c] sm:$0x1]  ;;  %v602_v23 = vshrl.u32 %v2896_v53, 16  ;;  %v442_v24 = vshll.u32 %v3754_v9, 16  ;;  %v600_v26 = vor.u32 %v599_v1, %v595_v59  ;;  %v613_v27 = vrot.slane %v611_v61, 1  ;;  %v3455_v53 = vld [vmem:[%s4478_s1] sm:$0xff]  }
  0x21   : > { %v606_v28 = vrot.slane %v604_v62, 1  ;;  %v3788_v29 = vcombine.low %v3757_v10, %v295_v20  ;;  %v593_v31 = vor.u32 %v592_v4, %v588_v60  ;;  %v3792_v32 = vld [vmem:[%s3661_s29 + $0x30] sm:$0xf]  ;;  %v293_v35 = vld [vmem:[%s3661_s29 + $0x34] sm:$0x1]  ;;  %v440_v39 = vshrl.u32 %v3754_v9, 16  ;;  %3293 = vmatprep.subr.bf16.mxu0 %v3455_v53 }
  0x22   : > { %473 = vrot.lane.b32.xlu1 %v3726_v42, %s3600_s9  ;;  %471 = vrot.lane.b32.xlu0 %v3729_v43, %s3600_s9  ;;  %v444_v40 = vrot.slane %v442_v24, 1  ;;  %v447_v44 = vshrl.u32 %v3784_v25, 16  ;;  %v449_v45 = vshll.u32 %v3784_v25, 16  ;;  %v614_v46 = vor.u32 %v613_v27, %v609_v22  ;;  %v3457_v59 = vld [vmem:[%s4478_s1 + $0x10] ss:$0 sps:$4 sm:$0x33]  }
  0x23   : > { %v461_v47 = vshrl.u32 %v3788_v29, 16  ;;  %v463_v48 = vshll.u32 %v3788_v29, 16  ;;  %v607_v49 = vor.u32 %v606_v28, %v602_v23  ;;  %v2902_v54 = vcombine.low %v3679_v6, %v3679_v6  ;;  %3294 = vmatpush3.bf16.msra.mxu0 %v3455_v53  ;;  %v3427_v60 = vld [vmem:[%s3661_s29 + $0x68] ss:$0 sps:$4 sm:$0xff]   ;;  %v315_v9 = vld [vmem:[%s3661_s29 + $0xb0] sm:$0xf] }
  0x24   : > { %v2905_v55 = vcombine.low %v3747_v63, %v3747_v63  ;;  %v2904_v58 = vcombine.low %v3688_v11, %v3688_v11  ;;  %v451_v61 = vrot.slane %v449_v45, 1  ;;  %v936_v4 = vsel %vm934_vm0, %v3457_v59, 0  ;;  %v318_v20 = vld [vmem:[%s3661_s29 + $0xbc] sm:$0x1]  ;;  %v321_v23 = vld [vmem:[%s3661_s29 + $0xc8] sm:$0xf] }
  0x25   : > { %v465_v62 = vrot.slane %v463_v48, 1  ;;  %v445_v7 = vor.u32 %v444_v40, %v440_v39  ;;  %v2882_v22 = vcombine.low %v315_v9, %v315_v9  ;;  %v316_v24 = vld [vmem:[%s3661_s29 + $0xb4] sm:$0x1]  ;;  %v319_v25 = vld [vmem:[%s3661_s29 + $0xc0] sm:$0xf]  ;;  %v2885_v27 = vcombine.low %v321_v23, %v321_v23 }
  0x26   : > { %513 = vrot.lane.b32.xlu1 %v2881_v50, %s3599_s8  ;;  %511 = vrot.lane.b32.xlu0 %v2880_v52, %s3599_s8  ;;  %v2876_v50 = vcombine.low %v3792_v32, %v293_v35  ;;  %v2898_v28 = vcombine.low %v315_v9, %v316_v24  ;;  %v322_v29 = vld [vmem:[%s3661_s29 + $0xcc] sm:$0x1]  ;;  %v320_v35 = vld [vmem:[%s3661_s29 + $0xc4] sm:$0x1]  ;;  %v2891_v40 = vcombine.low %v3760_v12, %v3760_v12 }
  0x27   : > { %v2901_v39 = vcombine.low %v321_v23, %v322_v29  ;;  %v2900_v45 = vcombine.low %v319_v25, %v320_v35  ;;  %v2893_v48 = vcombine.low %v3771_v17, %v3771_v17  ;;  %v3454_v23 = vld [vmem:[%s3661_s29 + $0x88] ss:$0 sps:$4 sm:$0xff]  }
  0x28   : > { %v454_v52 = vshrl.u32 %v2876_v50, 16  ;;  %v616_v53 = vshrl.u32 %v2898_v28, 16 }
  0x2a   : > { %549 = vrot.lane.b32.xlu1 %v2887_v56, %s3601_s10  ;;  %547 = vrot.lane.b32.xlu0 %v2886_v57, %s3601_s10  ;;  %v456_v56 = vshll.u32 %v2876_v50, 16  ;;  %v3456_v57 = vld [vmem:[%s4478_s1 + $0x8] sm:$0xff]  }
  0x2b   : > { %3295 = vmatprep.subr.bf16.mxu0 %v3456_v57 }
  0x2c   : > { %3296 = vmatpush3.bf16.msra.mxu0 %v3456_v57  ;;  %v458_v1 = vrot.slane %v456_v56, 1  ;;  %v637_v57 = vshrl.u32 %v2901_v39, 16 }
  0x2d   : > { %3381 = vmatprep.subr.msk.bf16.mxu0 %vm934_vm0, %v3457_v59 }
  0x2e   : > { %553 = vrot.lane.b32.xlu1 %v2889_v14, %s3601_s10  ;;  %551 = vrot.lane.b32.xlu0 %v2888_v19, %s3601_s10  ;;  %v3868_v14 = vor.u32 %v458_v1, %v454_v52  ;;  %v2892_v52 = vcombine.low %v3774_v18, %v3774_v18 }
  0x30   : > { %3298 = vmatpush3.bf16.msra.mxu0 %v936_v4  ;;  %v2907_v4 = vcombine.low %v3792_v32, %v3792_v32 }
  0x32   : > { %645 = vrot.lane.b32.xlu1 %v600_v26, %s3602_s11  ;;  %643 = vrot.lane.b32.xlu0 %v593_v31, %s3602_s11  ;;  %v2884_v31 = vcombine.low %v319_v25, %v319_v25 }
  0x36   : > { %649 = vrot.lane.b32.xlu1 %v614_v46, %s3602_s11  ;;  %647 = vrot.lane.b32.xlu0 %v607_v49, %s3602_s11  ;;  %v2890_v46 = vcombine.low %v3763_v13, %v3763_v13 }
  0x3a   : > { %671 = vrot.lane.b32.xlu1 %v2903_v51, %s3603_s14  ;;  %669 = vrot.lane.b32.xlu0 %v2902_v54, %s3603_s14  ;;  %v639_v51 = vshll.u32 %v2901_v39, 16 }
  0x3e   : > { %675 = vrot.lane.b32.xlu1 %v2905_v55, %s3603_s14  ;;  %673 = vrot.lane.b32.xlu0 %v2904_v58, %s3603_s14  ;;  %v632_v55 = vshll.u32 %v2900_v45, 16  ;;  %v641_v58 = vrot.slane %v639_v51, 1 }
  0x42   : > { %690 = vrot.lane.b32.xlu1 %v3664_v0, %s3604_s19  ;;  %688 = vrot.lane.b32.xlu0 %v3674_v3, %s3604_s19  ;;  %v3841_v0 = vld [vmem:[%s3661_s29 + $0x70] ss:$0 sps:$4 sm:$0xff]   ;;  %v3847_v3 = vld [vmem:[%s3661_s29 + $0x80] ss:$0 sps:$4 sm:$0xff]  }
  0x46   : > { %694 = vrot.lane.b32.xlu1 %v3427_v60, %s3604_s19  ;;  %692 = vrot.lane.b32.xlu0 %v3670_v2, %s3604_s19  ;;  %v3850_v2 = vld [vmem:[%s3661_s29 + $0x78] ss:$0 sps:$4 sm:$0xff]  }
  0x4a   : > { %716 = vrot.lane.b32.xlu1 %v3729_v43, %s3605_s20  ;;  %714 = vrot.lane.b32.xlu0 %v3704_v30, %s3605_s20  ;;  %v3857_v30 = vor.u32 %v451_v61, %v447_v44  ;;  %v3864_v43 = vor.u32 %v465_v62, %v461_v47  ;;  %v618_v47 = vshll.u32 %v2898_v28, 16  ;;  %v634_v61 = vrot.slane %v632_v55, 1 }
  0x4b   : > { %v642_v62 = vor.u32 %v641_v58, %v637_v57 }
  0x4c   : > { %v620_v54 = vrot.slane %v618_v47, 1 }
  0x4e   : > { %720 = vrot.lane.b32.xlu1 %v445_v7, %s3605_s20  ;;  %718 = vrot.lane.b32.xlu0 %v3726_v42, %s3605_s20  ;;  %v317_v42 = vld [vmem:[%s3661_s29 + $0xb8] sm:$0xf]  ;;  %v621_v59 = vor.u32 %v620_v54, %v616_v53 }
  0x4f   : > { %v2883_v19 = vcombine.low %v317_v42, %v317_v42  ;;  %v2899_v26 = vcombine.low %v317_v42, %v318_v20  ;;  %v296_v42 = vld [vmem:[%s3661_s29 + $0x40] sm:$0xf]  ;;  %v2908_v20 = vcombine.low %v3757_v10, %v3757_v10 }
  0x50   : > { %v2909_v9 = vcombine.low %v296_v42, %v296_v42 }
  0x51   : > { %v625_v44 = vshll.u32 %v2899_v26, 16  ;;  %v623_v49 = vshrl.u32 %v2899_v26, 16 }
  0x52   : > { %365 = vrot.lane.b32.xlu1 %v3841_v0, %s3598_s30  ;;  %363 = vrot.lane.b32.xlu0 %v3427_v60, %s3598_s30  ;;  %v630_v60 = vshrl.u32 %v2900_v45, 16 }
  0x53   : > { %v627_v50 = vrot.slane %v625_v44, 1 }
  0x54   : > { %v635_v1 = vor.u32 %v634_v61, %v630_v60 }
  0x55   : > { %v628_v56 = vor.u32 %v627_v50, %v623_v49 }
  0x56   : > { %369 = vrot.lane.b32.xlu1 %v3847_v3, %s3598_s30  ;;  %367 = vrot.lane.b32.xlu0 %v3850_v2, %s3598_s30 }
  0x5a   : > { %477 = vrot.lane.b32.xlu1 %v3857_v30, %s3600_s9  ;;  %475 = vrot.lane.b32.xlu0 %v445_v7, %s3600_s9  ;;  %v2906_v7 = vcombine.low %v3750_v5, %v3750_v5 }
  0x5e   : > { %481 = vrot.lane.b32.xlu1 %v3864_v43, %s3600_s9  ;;  %479 = vrot.lane.b32.xlu0 %v3868_v14, %s3600_s9 }
  0x62   : > { %517 = vrot.lane.b32.xlu1 %v2883_v19, %s3599_s8  ;;  %515 = vrot.lane.b32.xlu0 %v2882_v22, %s3599_s8  ;;  %v297_v19 = vld [vmem:[%s3661_s29 + $0x44] sm:$0x1] }
  0x63   : > { %v2911_v22 = vcombine.low %v296_v42, %v297_v19 }
  0x65   : > { %v710_v24 = vshll.u32 %v2911_v22, 16  ;;  %v708_v28 = vshrl.u32 %v2911_v22, 16 }
  0x66   : > { %521 = vrot.lane.b32.xlu1 %v2885_v27, %s3599_s8  ;;  %519 = vrot.lane.b32.xlu0 %v2884_v31, %s3599_s8  ;;  %v3458_v27 = vld [vmem:[%s4480_s3 + $0xc0] sm:$0xff]   ;;  %s278_s8 = scalar_lea.vmem %s4484_s7, %s3100_s28 }
  0x67   : > { %v712_v29 = vrot.slane %v710_v24, 1  ;;  %3156 = vmatprep.subr.bf16.mxu0 %v3458_v27 }
  0x6a   : > { %557 = vrot.lane.b32.xlu1 %v2891_v40, %s3601_s10  ;;  %555 = vrot.lane.b32.xlu0 %v2890_v46, %s3601_s10 }
  0x6e   : > { %561 = vrot.lane.b32.xlu1 %v2893_v48, %s3601_s10  ;;  %559 = vrot.lane.b32.xlu0 %v2892_v52, %s3601_s10 }
  0x72   : > { %653 = vrot.lane.b32.xlu1 %v628_v56, %s3602_s11  ;;  %651 = vrot.lane.b32.xlu0 %v621_v59, %s3602_s11 }
  0x76   : > { %657 = vrot.lane.b32.xlu1 %v642_v62, %s3602_s11  ;;  %655 = vrot.lane.b32.xlu0 %v635_v1, %s3602_s11 }
  0x7a   : > { %679 = vrot.lane.b32.xlu1 %v2907_v4, %s3603_s14  ;;  %677 = vrot.lane.b32.xlu0 %v2906_v7, %s3603_s14 }
  0x7e   : > { %683 = vrot.lane.b32.xlu1 %v2909_v9, %s3603_s14  ;;  %681 = vrot.lane.b32.xlu0 %v2908_v20, %s3603_s14 }
  0x82   : > { %698 = vrot.lane.b32.xlu1 %v3850_v2, %s3604_s19  ;;  %696 = vrot.lane.b32.xlu0 %v3841_v0, %s3604_s19  ;;  %v713_v0 = vor.u32 %v712_v29, %v708_v28 }
  0x84   : > { %v360_v25 = vpop.permute.xlu1 %359  ;;  %v356_v26 = vpop.permute.xlu0 %355 }
  0x85   : > { %v733_v59 = vsel %vm730_vm1, %v3683_v8, %v356_v26  ;;  %v739_v20 = vsel %vm730_vm1, %v3696_v16, %v360_v25 }
  0x86   : > { %702 = vrot.lane.b32.xlu1 %v3454_v23, %s3604_s19  ;;  %700 = vrot.lane.b32.xlu0 %v3847_v3, %s3604_s19 }
  0x88   : > { %v362_v2 = vpop.permute.xlu1 %361  ;;  %v358_v31 = vpop.permute.xlu0 %357 }
  0x89   : > { %v742_v8 = vsel %vm730_vm1, %v3688_v11, %v362_v2 }
  0x8a   : > { %724 = vrot.lane.b32.xlu1 %v3868_v14, %s3605_s20  ;;  %722 = vrot.lane.b32.xlu0 %v3857_v30, %s3605_s20 }
  0x8c   : > { %v510_v35 = vpop.permute.xlu1 %509  ;;  %v508_v39 = vpop.permute.xlu0 %507 }
  0x8e   : > { %728 = vrot.lane.b32.xlu1 %v713_v0, %s3605_s20  ;;  %726 = vrot.lane.b32.xlu0 %v3864_v43, %s3605_s20  ;;  %v736_v43 = vsel %vm730_vm1, %v3679_v6, %v358_v31 }
  0x90   : > { %v470_v40 = vpop.permute.xlu1 %469  ;;  %v468_v44 = vpop.permute.xlu0 %467 }
  0x91   : > { %v759_v60 = vsel %vm755_vm2, %v736_v43, %v470_v40  ;;  %v757_v62 = vsel %vm755_vm2, %v733_v59, %v468_v44 }
  0x92   : > { %v776_v1 = vsel %vm772_vm3, %v759_v60, %v510_v35  ;;  %v774_v6 = vsel %vm772_vm3, %v757_v62, %v508_v39 }
  0x94   : > { %v474_v3 = vpop.permute.xlu1 %473  ;;  %v472_v45 = vpop.permute.xlu0 %471 }
  0x95   : > { %v763_v22 = vsel %vm755_vm2, %v742_v8, %v474_v3  ;;  %v761_v26 = vsel %vm755_vm2, %v739_v20, %v472_v45 }
  0x98   : > { %v514_v46 = vpop.permute.xlu1 %513  ;;  %v512_v47 = vpop.permute.xlu0 %511 }
  0x99   : > { %v780_v27 = vsel %vm772_vm3, %v763_v22, %v514_v46  ;;  %v778_v2 = vsel %vm772_vm3, %v761_v26, %v512_v47 }
  0x9c   : > { %v550_v48 = vpop.permute.xlu1 %549  ;;  %v548_v49 = vpop.permute.xlu0 %547 }
  0x9d   : > { %v793_v7 = vsel %vm789_vm4, %v776_v1, %v550_v48  ;;  %v791_v9 = vsel %vm789_vm4, %v774_v6, %v548_v49 }
  0xa0   : > { %v554_v14 = vpop.permute.xlu1 %553  ;;  %v552_v50 = vpop.permute.xlu0 %551 }
  0xa1   : > { %v797_v31 = vsel %vm789_vm4, %v780_v27, %v554_v14  ;;  %v795_v35 = vsel %vm789_vm4, %v778_v2, %v552_v50 }
  0xa4   : > { %v646_v51 = vpop.permute.xlu1 %645  ;;  %v644_v52 = vpop.permute.xlu0 %643 }
  0xa5   : > { %v810_v19 = vsel %vm806_vm5, %v793_v7, %v646_v51  ;;  %v808_v23 = vsel %vm806_vm5, %v791_v9, %v644_v52  ;;  %v3459_v52 = vld [vmem:[%s4480_s3 + $0x80] sm:$0xff]  }
  0xa8   : > { %v650_v30 = vpop.permute.xlu1 %649  ;;  %v648_v53 = vpop.permute.xlu0 %647 }
  0xa9   : > { %v814_v39 = vsel %vm806_vm5, %v797_v31, %v650_v30  ;;  %v812_v44 = vsel %vm806_vm5, %v795_v35, %v648_v53 }
  0xac   : > { %v672_v54 = vpop.permute.xlu1 %671  ;;  %v670_v55 = vpop.permute.xlu0 %669 }
  0xad   : > { %v827_v24 = vsel %vm823_vm6, %v810_v19, %v672_v54  ;;  %v825_v11 = vsel %vm823_vm6, %v808_v23, %v670_v55 }
  0xb0   : > { %v676_v56 = vpop.permute.xlu1 %675  ;;  %v674_v57 = vpop.permute.xlu0 %673 }
  0xb1   : > { %v831_v3 = vsel %vm823_vm6, %v814_v39, %v676_v56  ;;  %v829_v46 = vsel %vm823_vm6, %v812_v44, %v674_v57 }
  0xb4   : > { %v691_v58 = vpop.permute.xlu1 %690  ;;  %v689_v61 = vpop.permute.xlu0 %688 }
  0xb5   : > { %v844_v28 = vsel %vm840_vm7, %v827_v24, %v691_v58  ;;  %v842_v16 = vsel %vm840_vm7, %v825_v11, %v689_v61 }
  0xb8   : > { %v695_v4 = vpop.permute.xlu1 %694  ;;  %v693_v42 = vpop.permute.xlu0 %692 }
  0xb9   : > { %v848_v47 = vsel %vm840_vm7, %v831_v3, %v695_v4  ;;  %v846_v49 = vsel %vm840_vm7, %v829_v46, %v693_v42 }
  0xbc   : > { %v717_v29 = vpop.permute.xlu1 %716  ;;  %v715_v0 = vpop.permute.xlu0 %714 }
  0xbd   : > { %v861_v25 = vsel %vm857_vm8, %v844_v28, %v717_v29  ;;  %v859_v40 = vsel %vm857_vm8, %v842_v16, %v715_v0 }
  0xbe   : > { %v2913_v45 = vcombine.low %v859_v40, %v861_v25 }
  0xc0   : > { %v721_v48 = vpop.permute.xlu1 %720  ;;  %3299 = vmatprep.mubr.msk.bf16.mxu0 %vm921_vm9, %v2913_v45  ;;  %v719_v50 = vpop.permute.xlu0 %718 }
  0xc1   : > { %v865_v14 = vsel %vm857_vm8, %v848_v47, %v721_v48  ;;  %v863_v51 = vsel %vm857_vm8, %v846_v49, %v719_v50 }
  0xc2   : > { %v2914_v30 = vcombine.low %v863_v51, %v865_v14 }
  0xc4   : > { %v366_v53 = vpop.permute.xlu1 %365  ;;  %3300 = vmatmul.mubr.msk.bf16.vlgmr.msra.gmra.mrb[0].mxu0 %vm921_vm9, %v2914_v30  ;;  %v364_v54 = vpop.permute.xlu0 %363 }
  0xc5   : > { %3157 = vmatpush3.bf16.msra.mxu0 %v3459_v52  ;;  %v748_v28 = vsel %vm730_vm1, %v3750_v5, %v366_v53  ;;  %v745_v29 = vsel %vm730_vm1, %v3747_v63, %v364_v54 }
  0xc8   : > { %v370_v55 = vpop.permute.xlu1 %369  ;;  %v368_v56 = vpop.permute.xlu0 %367 }
  0xc9   : > { %v754_v40 = vsel %vm730_vm1, %v3757_v10, %v370_v55  ;;  %v751_v63 = vsel %vm730_vm1, %v3792_v32, %v368_v56 }
  0xcc   : > { %v478_v57 = vpop.permute.xlu1 %477  ;;  %v476_v43 = vpop.permute.xlu0 %475 }
  0xcd   : > { %v767_v2 = vsel %vm755_vm2, %v748_v28, %v478_v57  ;;  %v765_v31 = vsel %vm755_vm2, %v745_v29, %v476_v43  ;;  %v3471_v28 = vld [vmem:[%s4480_s3 + $0x10] sm:$0xff]   ;;  %v3472_v29 = vld [vmem:[%s4480_s3 + $0xe0] sm:$0xff]  }
  0xd0   : > { %v482_v58 = vpop.permute.xlu1 %481  ;;  %v480_v59 = vpop.permute.xlu0 %479 }
  0xd1   : > { %v771_v3 = vsel %vm755_vm2, %v754_v40, %v482_v58  ;;  %v769_v47 = vsel %vm755_vm2, %v751_v63, %v480_v59  ;;  %v3480_v40 = vld [vmem:[%s4480_s3 + $0xf0] sm:$0xff]   ;;  %v3483_v63 = vld [vmem:[%s4480_s3 + $0x28] sm:$0xff]  }
  0xd4   : > { %v518_v60 = vpop.permute.xlu1 %517  ;;  %v516_v61 = vpop.permute.xlu0 %515 }
  0xd5   : > { %v784_v16 = vsel %vm772_vm3, %v767_v2, %v518_v60  ;;  %v782_v0 = vsel %vm772_vm3, %v765_v31, %v516_v61  ;;  %v3473_v2 = vld [vmem:[%s4480_s3 + $0x58] sm:$0xff]   ;;  %v3474_v31 = vld [vmem:[%s4480_s3 + $0xa0] sm:$0xff]  }
  0xd8   : > { %v522_v62 = vpop.permute.xlu1 %521  ;;  %v520_v1 = vpop.permute.xlu0 %519 }
  0xd9   : > { %v788_v48 = vsel %vm772_vm3, %v771_v3, %v522_v62  ;;  %v786_v50 = vsel %vm772_vm3, %v769_v47, %v520_v1  ;;  %v3484_v3 = vld [vmem:[%s4480_s3 + $0xf8] sm:$0xff]   ;;  %v3487_v47 = vld [vmem:[%s4480_s3 + $0x30] sm:$0xff]  }
  0xdc   : > { %v558_v4 = vpop.permute.xlu1 %557  ;;  %v556_v7 = vpop.permute.xlu0 %555 }
  0xdd   : > { %v801_v35 = vsel %vm789_vm4, %v784_v16, %v558_v4  ;;  %v799_v5 = vsel %vm789_vm4, %v782_v0, %v556_v7  ;;  %v3475_v16 = vld [vmem:[%s4480_s3 + $0x18] sm:$0xff]   ;;  %v3477_v0 = vld [vmem:[%s4480_s3 + $0x60] sm:$0xff]  }
  0xe0   : > { %v562_v6 = vpop.permute.xlu1 %561  ;;  %v560_v42 = vpop.permute.xlu0 %559 }
  0xe1   : > { %v805_v51 = vsel %vm789_vm4, %v788_v48, %v562_v6  ;;  %v803_v53 = vsel %vm789_vm4, %v786_v50, %v560_v42  ;;  %v3460_v6 = vld [vmem:[%s4480_s3 + $0xc8] sm:$0xff]   ;;  %v3461_v42 = vld [vmem:[%s4480_s3 + $0x40] sm:$0xff]   ;;  %v3493_v48 = vld [vmem:[%s4480_s3 + $0x78] sm:$0xff]  }
  0xe2   : > { %3158 = vmatprep.subr.bf16.mxu0 %v3460_v6  ;;  %3116 = vmatprep.subr.bf16.mxu1 %v3461_v42  ;;  %v4108_v50 = vld [vmem:[%s4479_s2] ss:$0 sm:$0xff] }
  0xe4   : > { %v654_v8 = vpop.permute.xlu1 %653  ;;  %v652_v9 = vpop.permute.xlu0 %651 }
  0xe5   : > { %v818_v44 = vsel %vm806_vm5, %v801_v35, %v654_v8  ;;  %v816_v45 = vsel %vm806_vm5, %v799_v5, %v652_v9  ;;  %v3462_v8 = vld [vmem:[%s4480_s3 + $0x88] sm:$0xff]   ;;  %v3463_v9 = vld [vmem:[%s4480_s3] sm:$0xff]  }
  0xe6   : > { %3159 = vmatpush3.bf16.msra.mxu0 %v3462_v8  ;;  %3117 = vmatpush3.bf16.msra.mxu1 %v3463_v9  ;;  %v3478_v35 = vld [vmem:[%s4480_s3 + $0xa8] sm:$0xff]  }
  0xe7   : > { %v3481_v5 = vld [vmem:[%s4480_s3 + $0x68] sm:$0xff]  }
  0xe8   : > { %v658_v19 = vpop.permute.xlu1 %657  ;;  %v656_v20 = vpop.permute.xlu0 %655 }
  0xe9   : > { %v822_v54 = vsel %vm806_vm5, %v805_v51, %v658_v19  ;;  %v820_v56 = vsel %vm806_vm5, %v803_v53, %v656_v20  ;;  %v3464_v19 = vld [vmem:[%s4480_s3 + $0xd0] sm:$0xff]   ;;  %v3606_v20 = vmov 0  }
  0xea   : > { %1017 = vst [vmem:[#allocation2 + $0x18] sm:$0xf] %v3606_v20  ;;  %1018 = vst [vmem:[#allocation2 + $0x1c] sm:$0x1] %v3606_v20  ;;  %3160 = vmatprep.subr.bf16.mxu0 %v3464_v19 }
  0xeb   : > { %1011 = vst [vmem:[#allocation2] sm:$0xf] %v3606_v20  ;;  %1012 = vst [vmem:[#allocation2 + $0x4] sm:$0x1] %v3606_v20 }
  0xec   : > { %v680_v22 = vpop.permute.xlu1 %679  ;;  %v678_v23 = vpop.permute.xlu0 %677  ;;  %1013 = vst [vmem:[#allocation2 + $0x8] sm:$0xf] %v3606_v20  ;;  %1014 = vst [vmem:[#allocation2 + $0xc] sm:$0x1] %v3606_v20 }
  0xed   : > { %v835_v46 = vsel %vm823_vm6, %v818_v44, %v680_v22  ;;  %v833_v49 = vsel %vm823_vm6, %v816_v45, %v678_v23  ;;  %1015 = vst [vmem:[#allocation2 + $0x10] sm:$0xf] %v3606_v20  ;;  %1016 = vst [vmem:[#allocation2 + $0x14] sm:$0x1] %v3606_v20  ;;  %v3465_v22 = vld [vmem:[%s4480_s3 + $0x48] sm:$0xff]   ;;  %v3466_v23 = vld [vmem:[%s4480_s3 + $0x90] sm:$0xff]  }
  0xee   : > { %1019 = vst [vmem:[#allocation2 + $0x20] sm:$0xf] %v3606_v20  ;;  %1020 = vst [vmem:[#allocation2 + $0x24] sm:$0x1] %v3606_v20  ;;  %3118 = vmatprep.subr.bf16.mxu1 %v3465_v22  ;;  %3161 = vmatpush3.bf16.msra.mxu0 %v3466_v23  ;;  %v3482_v44 = vld [vmem:[%s4480_s3 + $0xb0] sm:$0xff]  }
  0xef   : > { %1021 = vst [vmem:[#allocation2 + $0x28] sm:$0xf] %v3606_v20  ;;  %1022 = vst [vmem:[#allocation2 + $0x2c] sm:$0x1] %v3606_v20  ;;  %v3485_v45 = vld [vmem:[%s4480_s3 + $0x70] sm:$0xff]  }
  0xf0   : > { %v684_v24 = vpop.permute.xlu1 %683  ;;  %v682_v26 = vpop.permute.xlu0 %681  ;;  %1023 = vst [vmem:[#allocation2 + $0x30] sm:$0xf] %v3606_v20  ;;  %1024 = vst [vmem:[#allocation2 + $0x34] sm:$0x1] %v3606_v20 }
  0xf1   : > { %v839_v57 = vsel %vm823_vm6, %v822_v54, %v684_v24  ;;  %v837_v58 = vsel %vm823_vm6, %v820_v56, %v682_v26  ;;  %1025 = vst [vmem:[#allocation2 + $0x38] sm:$0xf] %v3606_v20  ;;  %1026 = vst [vmem:[#allocation2 + $0x3c] sm:$0x1] %v3606_v20  ;;  %v3467_v24 = vld [vmem:[%s4480_s3 + $0x8] sm:$0xff]   ;;  %v3468_v26 = vld [vmem:[%s4480_s3 + $0xd8] sm:$0xff]  }
  0xf2   : > { %1027 = vst [vmem:[#allocation2 + $0x40] sm:$0xf] %v3606_v20  ;;  %1028 = vst [vmem:[#allocation2 + $0x44] sm:$0x1] %v3606_v20  ;;  %3119 = vmatpush3.bf16.msra.mxu1 %v3467_v24  ;;  %3162 = vmatprep.subr.bf16.mxu0 %v3468_v26 }
  0xf3   : > { %1029 = vst [vmem:[#allocation2 + $0x48] sm:$0xf] %v3606_v20  ;;  %1030 = vst [vmem:[#allocation2 + $0x4c] sm:$0x1] %v3606_v20  ;;  %v1147_v20 = vld [vmem:[#allocation2 + $0x8] sm:$0xf] }
  0xf4   : > { %v699_v27 = vpop.permute.xlu1 %698  ;;  %v697_v11 = vpop.permute.xlu0 %696  ;;  %v1153_v22 = vld [vmem:[#allocation2 + $0xc] sm:$0x1] }
  0xf5   : > { %v852_v10 = vsel %vm840_vm7, %v835_v46, %v699_v27  ;;  %v850_v32 = vsel %vm840_vm7, %v833_v49, %v697_v11  ;;  %v3469_v27 = vld [vmem:[%s4480_s3 + $0x50] sm:$0xff]   ;;  %v3470_v11 = vld [vmem:[%s4480_s3 + $0x98] sm:$0xff]  }
  0xf6   : > { %3120 = vmatprep.subr.bf16.mxu1 %v3469_v27  ;;  %3163 = vmatpush3.bf16.msra.mxu0 %v3470_v11  ;;  %v3486_v46 = vld [vmem:[%s4480_s3 + $0xb8] sm:$0xff]   ;;  %v1168_v11 = vld [vmem:[#allocation2 + $0x20] sm:$0xf] }
  0xf7   : > { %3121 = vmatpush3.bf16.msra.mxu1 %v3471_v28  ;;  %3164 = vmatprep.subr.bf16.mxu0 %v3472_v29  ;;  %v3497_v49 = vld [vmem:[%s4480_s3 + $0x38] sm:$0xff]   ;;  %v1171_v28 = vld [vmem:[#allocation2 + $0x24] sm:$0x1] }
  0xf8   : > { %v703_v25 = vpop.permute.xlu1 %702  ;;  %v701_v39 = vpop.permute.xlu0 %700  ;;  %3122 = vmatprep.subr.bf16.mxu1 %v3473_v2 }
  0xf9   : > { %v856_v59 = vsel %vm840_vm7, %v839_v57, %v703_v25  ;;  %v854_v61 = vsel %vm840_vm7, %v837_v58, %v701_v39  ;;  %v3476_v25 = vld [vmem:[%s4480_s3 + $0xe8] sm:$0xff]   ;;  %v3479_v39 = vld [vmem:[%s4480_s3 + $0x20] sm:$0xff]  }
  0xfa   : > { %3165 = vmatpush3.bf16.msra.mxu0 %v3474_v31 }
  0xfb   : > { %3123 = vmatpush3.bf16.msra.mxu1 %v3475_v16  ;;  %3166 = vmatprep.subr.bf16.mxu0 %v3476_v25 }
  0xfc   : > { %v725_v14 = vpop.permute.xlu1 %724  ;;  %v723_v30 = vpop.permute.xlu0 %722  ;;  %3124 = vmatprep.subr.bf16.mxu1 %v3477_v0  ;;  %v1206_v0 = vld [vmem:[#allocation2 + $0x4] sm:$0x1] }
  0xfd   : > { %v869_v52 = vsel %vm857_vm8, %v852_v10, %v725_v14  ;;  %v867_v55 = vsel %vm857_vm8, %v850_v32, %v723_v30  ;;  %v3506_v10 = vld [vmem:[%s4480_s3 + $0x1c0] sm:$0xff]  }
  0xfe   : > { %v2915_v43 = vcombine.low %v867_v55, %v869_v52  ;;  %3167 = vmatpush3.bf16.msra.mxu0 %v3478_v35  ;;  %v3508_v14 = vld [vmem:[%s4480_s3 + $0x140] sm:$0xff]  }
  0xff   : > { %3125 = vmatpush3.bf16.msra.mxu1 %v3479_v39  ;;  %3168 = vmatprep.subr.bf16.mxu0 %v3480_v40 }
 0x100   : > { %v729_v60 = vpop.permute.xlu1 %728  ;;  %3303 = vmatprep.mubr.msk.bf16.mxu0 %vm921_vm9, %v2915_v43  ;;  %v727_v1 = vpop.permute.xlu0 %726  ;;  %3126 = vmatprep.subr.bf16.mxu1 %v3481_v5 }
 0x101   : > { %v873_v62 = vsel %vm857_vm8, %v856_v59, %v729_v60  ;;  %v871_v4 = vsel %vm857_vm8, %v854_v61, %v727_v1 }
 0x102   : > { %v2916_v7 = vcombine.low %v871_v4, %v873_v62  ;;  %3169 = vmatpush3.bf16.msra.mxu0 %v3482_v44  ;;  %v1162_v4 = vld [vmem:[#allocation2 + $0x18] sm:$0xf]  ;;  %v4122_v44 = vld [vmem:[#allocation2] sm:$0xf] }
 0x103   : > { %3127 = vmatpush3.bf16.msra.mxu1 %v3483_v63  ;;  %3170 = vmatprep.subr.bf16.mxu0 %v3484_v3 }
 0x104   : > { %3304 = vmatmul.mubr.msk.bf16.gmra.mrb[4].mxu0 %vm921_vm9, %v2916_v7  ;;  %3128 = vmatprep.subr.bf16.mxu1 %v3485_v45  ;;  %v1165_v7 = vld [vmem:[#allocation2 + $0x1c] sm:$0x1] }
 0x106   : > { %3171 = vmatpush3.bf16.msra.mxu0 %v3486_v46 }
 0x107   : > { %3129 = vmatpush3.bf16.msra.mxu1 %v3487_v47  ;;  %3236 = vmatprep.subr.bf16.mxu0 %v3506_v10  ;;  %v1156_v47 = vld [vmem:[#allocation2 + $0x10] sm:$0xf] }
 0x108   : > { %3130 = vmatprep.subr.bf16.mxu1 %v3493_v48  ;;  %v1159_v48 = vld [vmem:[#allocation2 + $0x14] sm:$0x1] }
 0x10b   : > { %3131 = vmatpush3.bf16.msra.mxu1 %v3497_v49 }
 0x10c   : > { %3196 = vmatprep.subr.bf16.mxu1 %v3508_v14 }
 0x197   : > { %v3301_v51 = vpop.f32.mrb[0].mxu0 }
 0x198   : > { %v981_v32 = vadd.f32 %v3301_v51, %v4108_v50  ;;  %v972_v52 = vpop.f32.mrb[1].mxu0 }
 0x199   : > { %v973_v30 = vadd.f32 %v4108_v50, %v972_v52  ;;  %v3302_v53 = vpop.f32.mrb[2].mxu0 }
 0x19a   : > { %v1005_v54 = vmax.f32 %v981_v32, 0.0  ;;  %v984_v55 = vadd.f32 %v3302_v53, %v4108_v50  ;;  %v975_v56 = vpop.f32.mrb[3].mxu0 }
 0x19b   : > { %v1003_v57 = vmax.f32 %v973_v30, 0.0  ;;  %v976_v43 = vadd.f32 %v4108_v50, %v975_v56  ;;  %v2932_v30 = vcombine.low %v4122_v44, %v1206_v0 }
 0x19c   : > { %v3103_v58 = vpack.c.bf16 %v1005_v54, %v1005_v54  ;;  %v1006_v59 = vmax.f32 %v984_v55, 0.0  ;;  %v1214_v55 = vld [vmem:[#allocation2] sm:$0xe] }
 0x19d   : > { %v3101_v60 = vpack.c.bf16 %v1003_v57, %v1003_v57  ;;  %v1004_v61 = vmax.f32 %v976_v43, 0.0  ;;  %v2940_v56 = vcombine.low %v1214_v55, %v1206_v0  ;;  %v1314_v57 = vshll.u32 %v2932_v30, 16 }
 0x19e   : > { %v1080_v62 = vshrl.u32 %v3103_v58, 16  ;;  %v3104_v1 = vpack.c.bf16 %v1006_v59, %v1006_v59  ;;  %v1083_v9 = vshll.u32 %v3103_v58, 16 }
 0x19f   : > { %v1064_v6 = vshrl.u32 %v3101_v60, 16  ;;  %v3102_v42 = vpack.c.bf16 %v1004_v61, %v1004_v61  ;;  %v1067_v27 = vshll.u32 %v3101_v60, 16  ;;  %v1391_v61 = vrot.slane %v2940_v56, 1 }
 0x1a0   : > { %v1082_v8 = vrot.slane %v1080_v62, 7  ;;  %v1088_v23 = vshrl.u32 %v3104_v1, 16  ;;  %v1091_v25 = vshll.u32 %v3104_v1, 16  ;;  %v1312_v62 = vshrl.u32 %v2932_v30, 16 }
 0x1a1   : > { %v1066_v26 = vrot.slane %v1064_v6, 7  ;;  %v1072_v29 = vshrl.u32 %v3102_v42, 16  ;;  %v1075_v5 = vshll.u32 %v3102_v42, 16  ;;  %v1316_v1 = vrot.slane %v1314_v57, 1 }
 0x1a2   : > { %v1085_v2 = vor.u32 %v1083_v9, %v1082_v8  ;;  %v1086_v31 = vrot.slane %v1082_v8, 4  ;;  %v1090_v16 = vrot.slane %v1088_v23, 7 }
 0x1a3   : > { %v1069_v35 = vor.u32 %v1067_v27, %v1066_v26  ;;  %v1070_v39 = vrot.slane %v1066_v26, 4  ;;  %v1074_v40 = vrot.slane %v1072_v29, 7 }
 0x1a4   : > { %v1163_v63 = vsel %vm4114_vm14, %v1085_v2, %v1162_v4  ;;  %v1166_v3 = vsel %vm4118_vm15, %v1086_v31, %v1165_v7  ;;  %v1093_v45 = vor.u32 %v1091_v25, %v1090_v16  ;;  %v1094_v46 = vrot.slane %v1090_v16, 4  ;;  %v3507_v25 = vld [vmem:[%s4480_s3 + $0x180] sm:$0xff]  }
 0x1a5   : > { %1164 = vst [vmem:[#allocation2 + $0x18] sm:$0xf] %v1163_v63  ;;  %1167 = vst [vmem:[#allocation2 + $0x1c] sm:$0x1] %v1166_v3  ;;  %v1148_v49 = vsel %vm4114_vm14, %v1069_v35, %v1147_v20  ;;  %v1154_v10 = vsel %vm4118_vm15, %v1070_v39, %v1153_v22  ;;  %v1077_v14 = vor.u32 %v1075_v5, %v1074_v40  ;;  %v1078_v51 = vrot.slane %v1074_v40, 4  ;;  %v3509_v63 = vld [vmem:[%s4480_s3 + $0x1c8] sm:$0xff]  }
 0x1a6   : > { %1149 = vst [vmem:[#allocation2 + $0x8] sm:$0xf] %v1148_v49  ;;  %1155 = vst [vmem:[#allocation2 + $0xc] sm:$0x1] %v1154_v10  ;;  %v1169_v32 = vsel %vm4114_vm14, %v1093_v45, %v1168_v11  ;;  %v1172_v52 = vsel %vm4118_vm15, %v1094_v46, %v1171_v28  ;;  %v1317_v46 = vor.u32 %v1316_v1, %v1312_v62 }
 0x1a7   : > { %1170 = vst [vmem:[#allocation2 + $0x20] sm:$0xf] %v1169_v32  ;;  %1173 = vst [vmem:[#allocation2 + $0x24] sm:$0x1] %v1172_v52  ;;  %v1157_v53 = vsel %vm4114_vm14, %v1077_v14, %v1156_v47  ;;  %v1160_v54 = vsel %vm4118_vm15, %v1078_v51, %v1159_v48 }
 0x1a8   : > { %1158 = vst [vmem:[#allocation2 + $0x10] sm:$0xf] %v1157_v53  ;;  %1161 = vst [vmem:[#allocation2 + $0x14] sm:$0x1] %v1160_v54  ;;  %v3511_v54 = vld [vmem:[%s4480_s3 + $0x188] sm:$0xff]  }
 0x1ac   : > { %v4145_v42 = vld [vmem:[#allocation2 + $0x18] sm:$0xf]  ;;  %v1209_v29 = vld [vmem:[#allocation2 + $0x1c] sm:$0x1] }
 0x1ad   : > { %v1222_v43 = vld [vmem:[#allocation2 + $0x8] sm:$0xf]  ;;  %v4141_v58 = vld [vmem:[#allocation2 + $0xc] sm:$0x1]  ;;  %v1224_v35 = vld [vmem:[#allocation2 + $0x18] sm:$0xf]  ;;  %v2935_v40 = vcombine.low %v4145_v42, %v1209_v29 }
 0x1ae   : > { %v1207_v59 = vld [vmem:[#allocation2 + $0xc] sm:$0x1]  ;;  %v1215_v60 = vld [vmem:[#allocation2 + $0x8] sm:$0xe]  ;;  %v4148_v8 = vcombine.low %v1222_v43, %v4141_v58  ;;  %v1225_v22 = vld [vmem:[#allocation2 + $0x20] sm:$0xf] }
 0x1af   : > { %v1223_v4 = vld [vmem:[#allocation2 + $0x10] sm:$0xf]  ;;  %v4143_v7 = vld [vmem:[#allocation2 + $0x14] sm:$0x1]  ;;  %v2941_v6 = vcombine.low %v1215_v60, %v1207_v59  ;;  %v1199_v23 = vld [vmem:[#allocation2 + $0x8] sm:$0xf]  ;;  %v2993_v45 = vcombine.low %v1224_v35, %v1225_v22 }
 0x1b0   : > { %v2949_v9 = vcombine.low %v1223_v4, %v4143_v7  ;;  %v2984_v20 = vcombine.low %v1222_v43, %v1223_v4  ;;  %v4151_v26 = vld [vmem:[#allocation2 + $0x10] sm:$0xf]  ;;  %v2933_v11 = vcombine.low %v1199_v23, %v1207_v59  ;;  %v1208_v28 = vld [vmem:[#allocation2 + $0x14] sm:$0x1]  ;;  %v1217_v5 = vld [vmem:[#allocation2 + $0x18] sm:$0xe] }
 0x1b1   : > { %v1392_v27 = vrot.slane %v2941_v6, 1  ;;  %v2934_v31 = vcombine.low %v4151_v26, %v1208_v28  ;;  %v1216_v16 = vld [vmem:[#allocation2 + $0x10] sm:$0xe]  ;;  %v1442_v3 = vshll.u32 %v4148_v8, 16  ;;  %v1335_v10 = vshll.u32 %v2935_v40, 16 }
 0x1b2   : > { %v1449_v2 = vshll.u32 %v2949_v9, 16  ;;  %2455 = vmatprep.mubr.bf16.mxu0 %v2984_v20  ;;  %v1321_v39 = vshll.u32 %v2933_v11, 16  ;;  %v1319_v48 = vshrl.u32 %v2933_v11, 16  ;;  %v2942_v14 = vcombine.low %v1216_v16, %v1208_v28  ;;  %v4162_v32 = vld [vmem:[#allocation2 + $0x1c] sm:$0x1]  ;;  %v3513_v60 = vld [vmem:[%s4480_s3 + $0x1d0] sm:$0xff]  }
 0x1b3   : > { %v2983_v0 = vcombine.low %v1391_v61, %v1392_v27  ;;  %v1328_v47 = vshll.u32 %v2934_v31, 16  ;;  %v1326_v52 = vshrl.u32 %v2934_v31, 16  ;;  %v2943_v53 = vcombine.low %v1217_v5, %v1209_v29  ;;  %v4167_v55 = vld [vmem:[#allocation2 + $0x24] sm:$0x1]  ;;  %v3516_v5 = vld [vmem:[%s4480_s3 + $0x150] sm:$0xff]  }
 0x1b4   : > { %v1323_v49 = vrot.slane %v1321_v39, 1  ;;  %v1451_v51 = vrot.slane %v1449_v2, 1  ;;  %v1333_v57 = vshrl.u32 %v2935_v40, 16  ;;  %v1337_v43 = vrot.slane %v1335_v10, 1  ;;  %v3510_v31 = vld [vmem:[%s4480_s3 + $0x100] sm:$0xff]   ;;  %v3519_v39 = vld [vmem:[%s4480_s3 + $0x198] sm:$0xff]  }
 0x1b5   : > { %2456 = vmatmul.mubr.bf16.vlgmr.msra.gmra.mrb[8].mxu0 %v2983_v0  ;;  %v1330_v30 = vrot.slane %v1328_v47, 1  ;;  %v1393_v59 = vrot.slane %v2942_v14, 1  ;;  %v1444_v61 = vrot.slane %v1442_v3, 1  ;;  %v1447_v62 = vshrl.u32 %v2949_v9, 16  ;;  %v3515_v9 = vld [vmem:[%s4480_s3 + $0x190] sm:$0xff]   ;;  %v3533_v47 = vld [vmem:[%s4480_s3 + $0x1a0] sm:$0xff]  }
 0x1b6   : > { %2463 = vmatprep.mubr.bf16.mxu0 %v2993_v45  ;;  %3237 = vmatpush3.bf16.msra.mxu0 %v3507_v25  ;;  %v1324_v56 = vor.u32 %v1323_v49, %v1319_v48  ;;  %v2950_v4 = vcombine.low %v1224_v35, %v4162_v32  ;;  %v1338_v20 = vor.u32 %v1337_v43, %v1333_v57  ;;  %v1394_v27 = vrot.slane %v2943_v53, 1  ;;  %v3514_v35 = vld [vmem:[%s4480_s3 + $0x108] sm:$0xff]   ;;  %v3527_v14 = vld [vmem:[%s4480_s3 + $0x158] sm:$0xff]   ;;  %v3537_v57 = vld [vmem:[%s4480_s3 + $0x120] sm:$0xff]  }
 0x1b7   : > { %3238 = vmatprep.subr.bf16.mxu0 %v3509_v63  ;;  %v1331_v1 = vor.u32 %v1330_v30, %v1326_v52  ;;  %v1440_v11 = vshrl.u32 %v4148_v8, 16  ;;  %v4174_v28 = vor.u32 %v1451_v51, %v1447_v62  ;;  %v2951_v29 = vcombine.low %v1225_v22, %v4167_v55  ;;  %v3512_v8 = vld [vmem:[%s4480_s3 + $0x148] sm:$0xff]   ;;  %v3528_v63 = vld [vmem:[%s4480_s3 + $0x1e0] sm:$0xff]   ;;  %v3532_v52 = vld [vmem:[%s4480_s3 + $0x118] sm:$0xff]  }
 0x1b8   : > { %v2982_v6 = vcombine.low %v1317_v46, %v1324_v56  ;;  %v2981_v2 = vcombine.low %v4122_v44, %v1199_v23  ;;  %v2992_v25 = vcombine.low %v1393_v59, %v1394_v27  ;;  %v3517_v44 = vld [vmem:[%s4480_s3 + $0x1d8] sm:$0xff]   ;;  %v1456_v23 = vshll.u32 %v2950_v4, 16  ;;  %v3518_v46 = vld [vmem:[%s4480_s3 + $0x110] sm:$0xff]   ;;  %v3538_v30 = vld [vmem:[%s4480_s3 + $0x1a8] sm:$0xff]  }
 0x1b9   : > { %v2991_v16 = vcombine.low %v1331_v1, %v1338_v20  ;;  %v4190_v22 = vor.u32 %v1444_v61, %v1440_v11  ;;  %v1463_v0 = vshll.u32 %v2951_v29, 16  ;;  %v2990_v45 = vcombine.low %v4151_v26, %v4145_v42  ;;  %v3535_v42 = vld [vmem:[%s4480_s3 + $0x1e8] sm:$0xff]   ;;  %v3544_v56 = vld [vmem:[%s4480_s3 + $0x1f0] sm:$0xff]   ;;  %v3553_v62 = vld [vmem:[%s4480_s3 + $0x1b8] sm:$0xff]  }
 0x1ba   : > { %3239 = vmatpush3.bf16.msra.mxu0 %v3511_v54  ;;  %2390 = vmatprep.mubr.bf16.mxu1 %v2982_v6  ;;  %v1458_v3 = vrot.slane %v1456_v23, 1  ;;  %v1454_v48 = vshrl.u32 %v2950_v4, 16  ;;  %v1461_v49 = vshrl.u32 %v2951_v29, 16  ;;  %v3534_v54 = vld [vmem:[%s4480_s3 + $0x160] sm:$0xff]   ;;  %v3546_v43 = vld [vmem:[%s4480_s3 + $0x1b0] sm:$0xff]   ;;  %v3543_v59 = vld [vmem:[%s4480_s3 + $0x168] sm:$0xff]  }
 0x1bb   : > { %3240 = vmatprep.subr.bf16.mxu0 %v3513_v60  ;;  %2391 = vmatmul.mubr.bf16.vlgmr.msra.gmra.mrb[0].mxu1 %v2981_v2  ;;  %v2985_v40 = vcombine.low %v4190_v22, %v4174_v28  ;;  %v1465_v10 = vrot.slane %v1463_v0, 1  ;;  %v3550_v60 = vld [vmem:[%s4480_s3 + $0x1f8] sm:$0xff]   ;;  %v3545_v61 = vld [vmem:[%s4480_s3 + $0x128] sm:$0xff]   ;;  %v3549_v1 = vld [vmem:[%s4480_s3 + $0x170] sm:$0xff]  }
 0x1bc   : > { %2398 = vmatprep.mubr.bf16.mxu1 %v2991_v16  ;;  %3197 = vmatpush3.bf16.msra.mxu1 %v3510_v31  ;;  %v4220_v26 = vor.u32 %v1458_v3, %v1454_v48  ;;  %v4262_v4 = vld [vmem:[%s4480_s3 + $0x200] sm:$0xff]   ;;  %v3552_v6 = vld [vmem:[%s4480_s3 + $0x130] sm:$0xff]   ;;  %v3556_v20 = vld [vmem:[%s4480_s3 + $0x178] sm:$0xff]  }
 0x1bd   : > { %2464 = vmatmul.mubr.bf16.gmra.mrb[12].mxu0 %v2992_v25  ;;  %3198 = vmatprep.subr.bf16.mxu1 %v3512_v8  ;;  %v4222_v51 = vor.u32 %v1465_v10, %v1461_v49  ;;  %v3559_v27 = vld [vmem:[%s4480_s3 + $0x138] sm:$0xff]  }
 0x1be   : > { %3241 = vmatpush3.bf16.msra.mxu0 %v3515_v9 }
 0x1bf   : > { %3242 = vmatprep.subr.bf16.mxu0 %v3517_v44 }
 0x1c0   : > { %3199 = vmatpush3.bf16.msra.mxu1 %v3514_v35 }
 0x1c1   : > { %3200 = vmatprep.subr.bf16.mxu1 %v3516_v5 }
 0x1c2   : > { %3243 = vmatpush3.bf16.msra.mxu0 %v3519_v39 }
 0x1c3   : > { %3244 = vmatprep.subr.bf16.mxu0 %v3528_v63  ;;  %2399 = vmatmul.mubr.bf16.gmra.mrb[4].mxu1 %v2990_v45  ;;  %v1186_v45 = vld [vmem:[#allocation2 + $0x38] sm:$0xf] }
 0x1c4   : > { %3201 = vmatpush3.bf16.msra.mxu1 %v3518_v46  ;;  %v1189_v46 = vld [vmem:[#allocation2 + $0x3c] sm:$0x1] }
 0x1c5   : > { %3202 = vmatprep.subr.bf16.mxu1 %v3527_v14  ;;  %v1174_v14 = vld [vmem:[#allocation2 + $0x28] sm:$0xf] }
 0x1c6   : > { %3245 = vmatpush3.bf16.msra.mxu0 %v3533_v47 }
 0x1c7   : > { %3246 = vmatprep.subr.bf16.mxu0 %v3535_v42  ;;  %v1177_v42 = vld [vmem:[#allocation2 + $0x2c] sm:$0x1] }
 0x1c8   : > { %3203 = vmatpush3.bf16.msra.mxu1 %v3532_v52 }
 0x1c9   : > { %3204 = vmatprep.subr.bf16.mxu1 %v3534_v54 }
 0x1ca   : > { %3247 = vmatpush3.bf16.msra.mxu0 %v3538_v30 }
 0x1cb   : > { %3248 = vmatprep.subr.bf16.mxu0 %v3544_v56  ;;  %v1195_v56 = vld [vmem:[#allocation2 + $0x44] sm:$0x1] }
 0x1cc   : > { %3205 = vmatpush3.bf16.msra.mxu1 %v3537_v57 }
 0x1cd   : > { %3206 = vmatprep.subr.bf16.mxu1 %v3543_v59 }
 0x1ce   : > { %3249 = vmatpush3.bf16.msra.mxu0 %v3546_v43 }
 0x1cf   : > { %3250 = vmatprep.subr.bf16.mxu0 %v3550_v60 }
 0x1d0   : > { %3207 = vmatpush3.bf16.msra.mxu1 %v3545_v61 }
 0x1d1   : > { %3208 = vmatprep.subr.bf16.mxu1 %v3549_v1 }
 0x1d2   : > { %3251 = vmatpush3.bf16.msra.mxu0 %v3553_v62  ;;  %v4279_v62 = vld [vmem:[#allocation2 + $0x20] sm:$0xf] }
 0x1d3   : > { %3307 = vmatprep.subr.bf16.mxu0 %v4262_v4 }
 0x1d4   : > { %3209 = vmatpush3.bf16.msra.mxu1 %v3552_v6 }
 0x1d5   : > { %3210 = vmatprep.subr.bf16.mxu1 %v3556_v20 }
 0x1d7   : > { %v3305_v11 = vpop.f32.mrb[4].mxu0 }
 0x1d8   : > { %v997_v29 = vadd.f32 %v3305_v11, %v4108_v50  ;;  %v988_v2 = vpop.f32.mrb[5].mxu0  ;;  %3211 = vmatpush3.bf16.msra.mxu1 %v3559_v27  ;;  %v1210_v11 = vld [vmem:[#allocation2 + $0x24] sm:$0x1] }
 0x1d9   : > { %v989_v31 = vadd.f32 %v4108_v50, %v988_v2  ;;  %v3306_v9 = vpop.f32.mrb[6].mxu0  ;;  %3341 = vmatprep.subr.bf16.mxu1 %v4262_v4 }
 0x1da   : > { %v1009_v16 = vmax.f32 %v997_v29, 0.0  ;;  %v1000_v25 = vadd.f32 %v3306_v9, %v4108_v50  ;;  %v991_v8 = vpop.f32.mrb[7].mxu0 }
 0x1db   : > { %v1007_v44 = vmax.f32 %v989_v31, 0.0  ;;  %v992_v23 = vadd.f32 %v4108_v50, %v991_v8  ;;  %v1192_v50 = vld [vmem:[#allocation2 + $0x40] sm:$0xf] }
 0x1dc   : > { %v3107_v0 = vpack.c.bf16 %v1009_v16, %v1009_v16  ;;  %v1010_v35 = vmax.f32 %v1000_v25, 0.0  ;;  %v1180_v16 = vld [vmem:[#allocation2 + $0x30] sm:$0xf]  ;;  %v1183_v25 = vld [vmem:[#allocation2 + $0x34] sm:$0x1] }
 0x1dd   : > { %v3105_v39 = vpack.c.bf16 %v1007_v44, %v1007_v44  ;;  %v1008_v5 = vmax.f32 %v992_v23, 0.0 }
 0x1de   : > { %v1112_v63 = vshrl.u32 %v3107_v0, 16  ;;  %v3108_v3 = vpack.c.bf16 %v1010_v35, %v1010_v35  ;;  %v1115_v10 = vshll.u32 %v3107_v0, 16  ;;  %v4289_v35 = vld [vmem:[#allocation2 + $0x10] sm:$0xf] }
 0x1df   : > { %v1096_v47 = vshrl.u32 %v3105_v39, 16  ;;  %v3106_v48 = vpack.c.bf16 %v1008_v5, %v1008_v5  ;;  %v1099_v54 = vshll.u32 %v3105_v39, 16  ;;  %v4291_v39 = vld [vmem:[#allocation2 + $0x14] sm:$0x1] }
 0x1e0   : > { %v1114_v49 = vrot.slane %v1112_v63, 7  ;;  %v1120_v52 = vshrl.u32 %v3108_v3, 16  ;;  %v1123_v61 = vshll.u32 %v3108_v3, 16  ;;  %v1218_v3 = vld [vmem:[#allocation2 + $0x20] sm:$0xe] }
 0x1e1   : > { %v1098_v30 = vrot.slane %v1096_v47, 7  ;;  %v1104_v57 = vshrl.u32 %v3106_v48, 16  ;;  %v1107_v27 = vshll.u32 %v3106_v48, 16  ;;  %v2964_v48 = vcombine.low %v4289_v35, %v4291_v39 }
 0x1e2   : > { %v1117_v43 = vor.u32 %v1115_v10, %v1114_v49  ;;  %v1118_v59 = vrot.slane %v1114_v49, 4  ;;  %v1122_v60 = vrot.slane %v1120_v52, 7  ;;  %v2944_v49 = vcombine.low %v1218_v3, %v1210_v11  ;;  %v4304_v10 = vld [vmem:[#allocation2 + $0x18] sm:$0xf] }
 0x1e3   : > { %v1101_v1 = vor.u32 %v1099_v54, %v1098_v30  ;;  %v1102_v6 = vrot.slane %v1098_v30, 4  ;;  %v1106_v20 = vrot.slane %v1104_v57, 7  ;;  %v1570_v19 = vshll.u32 %v2964_v48, 16 }
 0x1e4   : > { %v1187_v29 = vsel %vm4114_vm14, %v1117_v43, %v1186_v45  ;;  %v1190_v2 = vsel %vm4118_vm15, %v1118_v59, %v1189_v46  ;;  %v1125_v31 = vor.u32 %v1123_v61, %v1122_v60  ;;  %v1126_v9 = vrot.slane %v1122_v60, 4 }
 0x1e5   : > { %1188 = vst [vmem:[#allocation2 + $0x38] sm:$0xf] %v1187_v29  ;;  %1191 = vst [vmem:[#allocation2 + $0x3c] sm:$0x1] %v1190_v2  ;;  %v1175_v8 = vsel %vm4114_vm14, %v1101_v1, %v1174_v14  ;;  %v1178_v44 = vsel %vm4118_vm15, %v1102_v6, %v1177_v42  ;;  %v1109_v23 = vor.u32 %v1107_v27, %v1106_v20  ;;  %v1110_v0 = vrot.slane %v1106_v20, 4 }
 0x1e6   : > { %1176 = vst [vmem:[#allocation2 + $0x28] sm:$0xf] %v1175_v8  ;;  %1179 = vst [vmem:[#allocation2 + $0x2c] sm:$0x1] %v1178_v44  ;;  %v1193_v5 = vsel %vm4114_vm14, %v1125_v31, %v1192_v50  ;;  %v1196_v63 = vsel %vm4118_vm15, %v1126_v9, %v1195_v56  ;;  %v2936_v45 = vcombine.low %v4279_v62, %v1210_v11  ;;  %v4306_v14 = vld [vmem:[#allocation2 + $0x1c] sm:$0x1] }
 0x1e7   : > { %1194 = vst [vmem:[#allocation2 + $0x40] sm:$0xf] %v1193_v5  ;;  %1197 = vst [vmem:[#allocation2 + $0x44] sm:$0x1] %v1196_v63  ;;  %v1181_v46 = vsel %vm4114_vm14, %v1109_v23, %v1180_v16  ;;  %v1184_v47 = vsel %vm4118_vm15, %v1110_v0, %v1183_v25  ;;  %v4310_v52 = vcombine.low %v4304_v10, %v4306_v14  ;;  %v1395_v24 = vrot.slane %v2944_v49, 1 }
 0x1e8   : > { %1182 = vst [vmem:[#allocation2 + $0x30] sm:$0xf] %v1181_v46  ;;  %1185 = vst [vmem:[#allocation2 + $0x34] sm:$0x1] %v1184_v47  ;;  %v1342_v42 = vshll.u32 %v2936_v45, 16  ;;  %v1340_v54 = vshrl.u32 %v2936_v45, 16 }
 0x1e9   : > { %v1568_v43 = vshrl.u32 %v2964_v48, 16  ;;  %v4321_v20 = vld [vmem:[#allocation2 + $0x20] sm:$0xf]  ;;  %v4323_v27 = vld [vmem:[#allocation2 + $0x24] sm:$0x1]  ;;  %v1572_v31 = vrot.slane %v1570_v19, 1 }
 0x1ea   : > { %v1344_v57 = vrot.slane %v1342_v42, 1  ;;  %v1577_v9 = vshll.u32 %v4310_v52, 16  ;;  %v1575_v53 = vshrl.u32 %v4310_v52, 16 }
 0x1eb   : > { %v1573_v36 = vor.u32 %v1572_v31, %v1568_v43 }
 0x1ec   : > { %v4319_v6 = vld [vmem:[#allocation2 + $0x38] sm:$0xf]  ;;  %v1213_v44 = vld [vmem:[#allocation2 + $0x3c] sm:$0x1]  ;;  %v1345_v0 = vor.u32 %v1344_v57, %v1340_v54  ;;  %v2966_v54 = vcombine.low %v4321_v20, %v4323_v27 }
 0x1ed   : > { %v4312_v30 = vld [vmem:[#allocation2 + $0x28] sm:$0xf]  ;;  %v1211_v50 = vld [vmem:[#allocation2 + $0x2c] sm:$0x1]  ;;  %v4332_v23 = vld [vmem:[#allocation2 + $0x38] sm:$0xf]  ;;  %v2939_v63 = vcombine.low %v4319_v6, %v1213_v44 }
 0x1ee   : > { %v1219_v56 = vld [vmem:[#allocation2 + $0x28] sm:$0xe]  ;;  %v2937_v61 = vcombine.low %v4312_v30, %v1211_v50  ;;  %v4330_v25 = vld [vmem:[#allocation2 + $0x40] sm:$0xf]  ;;  %v1221_v45 = vld [vmem:[#allocation2 + $0x38] sm:$0xe] }
 0x1ef   : > { %v4314_v59 = vld [vmem:[#allocation2 + $0x28] sm:$0xf]  ;;  %v4316_v60 = vld [vmem:[#allocation2 + $0x30] sm:$0xf]  ;;  %v2945_v1 = vcombine.low %v1219_v56, %v1211_v50  ;;  %v1212_v2 = vld [vmem:[#allocation2 + $0x34] sm:$0x1]  ;;  %v3011_v50 = vcombine.low %v4332_v23, %v4330_v25  ;;  %v2947_v21 = vcombine.low %v1221_v45, %v1213_v44 }
 0x1f0   : > { %v3002_v11 = vcombine.low %v4314_v59, %v4316_v60  ;;  %v4327_v29 = vld [vmem:[#allocation2 + $0x30] sm:$0xf]  ;;  %v1349_v8 = vshll.u32 %v2937_v61, 16  ;;  %v1347_v47 = vshrl.u32 %v2937_v61, 16  ;;  %v4336_v42 = vld [vmem:[#allocation2 + $0x28] sm:$0xf] }
 0x1f1   : > { %v1396_v16 = vrot.slane %v2945_v1, 1  ;;  %v2938_v5 = vcombine.low %v4327_v29, %v1212_v2  ;;  %v1220_v3 = vld [vmem:[#allocation2 + $0x30] sm:$0xe]  ;;  %v4338_v19 = vld [vmem:[#allocation2 + $0x2c] sm:$0x1]  ;;  %v1363_v1 = vshll.u32 %v2939_v63, 16 }
 0x1f2   : > { %2471 = vmatprep.mubr.bf16.mxu0 %v3002_v11  ;;  %v1351_v48 = vrot.slane %v1349_v8, 1  ;;  %v2946_v49 = vcombine.low %v1220_v3, %v1212_v2  ;;  %v1361_v2 = vshrl.u32 %v2939_v63, 16  ;;  %v1239_v8 = vld [vmem:[#allocation2 + $0x10] sm:$0xe]  ;;  %v2967_v3 = vcombine.low %v4336_v42, %v4338_v19  ;;  %v1238_v44 = vld [vmem:[#allocation2 + $0x8] sm:$0xe] }
 0x1f3   : > { %v3001_v46 = vcombine.low %v1395_v24, %v1396_v16  ;;  %v1356_v56 = vshll.u32 %v2938_v5, 16  ;;  %v1354_v11 = vshrl.u32 %v2938_v5, 16  ;;  %v1579_v24 = vrot.slane %v1577_v9, 1 }
 0x1f4   : > { %v1352_v57 = vor.u32 %v1351_v48, %v1347_v47  ;;  %v1365_v16 = vrot.slane %v1363_v1, 1  ;;  %v1397_v41 = vrot.slane %v2946_v49, 1  ;;  %v1591_v9 = vshll.u32 %v2967_v3, 16  ;;  %v4350_v48 = vld [vmem:[#allocation2 + $0x30] sm:$0xf] }
 0x1f5   : > { %2472 = vmatmul.mubr.bf16.gmra.mrb[16].mxu0 %v3001_v46  ;;  %v1358_v61 = vrot.slane %v1356_v56, 1  ;;  %v2999_v46 = vcombine.low %v4279_v62, %v4312_v30  ;;  %v1398_v45 = vrot.slane %v2947_v21, 1  ;;  %v2957_v63 = vcombine.low %v1239_v8, %v4143_v7  ;;  %v4355_v62 = vld [vmem:[#allocation2 + $0x38] sm:$0xf]  ;;  %v4357_v30 = vld [vmem:[#allocation2 + $0x3c] sm:$0x1] }
 0x1f6   : > { %2479 = vmatprep.mubr.bf16.mxu0 %v3011_v50  ;;  %v3000_v15 = vcombine.low %v1345_v0, %v1352_v57  ;;  %v1366_v5 = vor.u32 %v1365_v16, %v1361_v2  ;;  %v4352_v50 = vld [vmem:[#allocation2 + $0x34] sm:$0x1]  ;;  %v1580_v43 = vor.u32 %v1579_v24, %v1575_v53  ;;  %v1584_v31 = vshll.u32 %v2966_v54, 16  ;;  %v1241_v53 = vld [vmem:[#allocation2 + $0x20] sm:$0xe] }
 0x1f7   : > { %v1359_v47 = vor.u32 %v1358_v61, %v1354_v11  ;;  %v3010_v52 = vcombine.low %v1397_v41, %v1398_v45  ;;  %v2956_v49 = vcombine.low %v1238_v44, %v4141_v58  ;;  %v1593_v21 = vrot.slane %v1591_v9, 1  ;;  %v4363_v11 = vld [vmem:[#allocation2 + $0x48] sm:$0xf]  ;;  %v1240_v2 = vld [vmem:[#allocation2 + $0x18] sm:$0xe] }
 0x1f8   : > { %2406 = vmatprep.mubr.bf16.mxu1 %v3000_v15  ;;  %v2988_v15 = vcombine.low %v1573_v36, %v1580_v43  ;;  %v2968_v7 = vcombine.low %v4350_v48, %v4352_v50  ;;  %v1520_v56 = vrot.slane %v2957_v63, 1  ;;  %v1586_v1 = vrot.slane %v1584_v31, 1  ;;  %v4367_v8 = vld [vmem:[#allocation2 + $0x4c] sm:$0x1]  ;;  %v1235_v43 = vld [vmem:[#allocation2 + $0x34] sm:$0x1] }
 0x1f9   : > { %2407 = vmatmul.mubr.bf16.gmra.mrb[8].mxu1 %v2999_v46  ;;  %v3009_v0 = vcombine.low %v1359_v47, %v1366_v5  ;;  %v1589_v57 = vshrl.u32 %v2967_v3, 16  ;;  %v2969_v41 = vcombine.low %v4355_v62, %v4357_v30  ;;  %v1519_v58 = vrot.slane %v2956_v49, 1  ;;  %v4370_v3 = vld [vmem:[#allocation2 + $0x40] sm:$0xf]  ;;  %v4372_v5 = vld [vmem:[#allocation2 + $0x44] sm:$0x1] }
 0x1fa   : > { %v3008_v24 = vcombine.low %v4327_v29, %v4319_v6  ;;  %v1582_v36 = vshrl.u32 %v2966_v54, 16  ;;  %v1598_v16 = vshll.u32 %v2968_v7, 16  ;;  %v2959_v47 = vcombine.low %v1241_v53, %v4167_v55  ;;  %v3564_v29 = vld [vmem:[%s4480_s3 + $0x208] sm:$0xff]  }
 0x1fb   : > { %2414 = vmatprep.mubr.bf16.mxu1 %v3009_v0  ;;  %v1594_v61 = vor.u32 %v1593_v21, %v1589_v57  ;;  %v2986_v46 = vcombine.low %v1519_v58, %v1520_v56  ;;  %v1605_v9 = vshll.u32 %v2969_v41, 16  ;;  %v2987_v6 = vcombine.low %v4289_v35, %v4304_v10  ;;  %v1234_v49 = vld [vmem:[#allocation2 + $0x2c] sm:$0x1]  ;;  %v3568_v56 = vld [vmem:[%s4480_s3 + $0x210] sm:$0xff]   ;;  %v1242_v53 = vld [vmem:[#allocation2 + $0x28] sm:$0xe] }
 0x1fc   : > { %v1587_v44 = vor.u32 %v1586_v1, %v1582_v36  ;;  %v2958_v54 = vcombine.low %v1240_v2, %v4162_v32  ;;  %v2971_v55 = vcombine.low %v4363_v11, %v4367_v8  ;;  %v1600_v63 = vrot.slane %v1598_v16, 1 }
 0x1fd   : > { %2480 = vmatmul.mubr.bf16.gmra.mrb[20].mxu0 %v3010_v52  ;;  %v2970_v0 = vcombine.low %v4370_v3, %v4372_v5  ;;  %v1522_v31 = vrot.slane %v2959_v47, 1  ;;  %v1596_v35 = vshrl.u32 %v2968_v7, 16  ;;  %v1607_v10 = vrot.slane %v1605_v9, 1  ;;  %v1243_v52 = vld [vmem:[#allocation2 + $0x30] sm:$0xe] }
 0x1fe   : > { %2585 = vmatprep.mubr.bf16.mxu0 %v2988_v15  ;;  %v2997_v45 = vcombine.low %v1587_v44, %v1594_v61  ;;  %v1521_v32 = vrot.slane %v2958_v54, 1  ;;  %v1619_v15 = vshll.u32 %v2971_v55, 16  ;;  %v4386_v21 = vcombine.low %v4316_v60, %v1235_v43  ;;  %v1236_v44 = vld [vmem:[#allocation2 + $0x3c] sm:$0x1]  ;;  %v3575_v54 = vld [vmem:[%s4480_s3 + $0x220] sm:$0xff]  }
 0x1ff   : > { %v1601_v1 = vor.u32 %v1600_v63, %v1596_v35  ;;  %v1603_v57 = vshrl.u32 %v2969_v41, 16  ;;  %v1612_v58 = vshll.u32 %v2970_v0, 16  ;;  %v2961_v36 = vcombine.low %v1243_v52, %v1235_v43  ;;  %v3571_v41 = vld [vmem:[%s4480_s3 + $0x218] sm:$0xff]  }
 0x200   : > { %v2952_v7 = vcombine.low %v4314_v59, %v1234_v49  ;;  %v2996_v60 = vcombine.low %v4321_v20, %v4336_v42  ;;  %v2960_v2 = vcombine.low %v1242_v53, %v1234_v49  ;;  %v1617_v16 = vshrl.u32 %v2971_v55, 16  ;;  %v1245_v42 = vld [vmem:[#allocation2 + $0x40] sm:$0xe]  ;;  %v1244_v43 = vld [vmem:[#allocation2 + $0x38] sm:$0xe] }
 0x201   : > { %2415 = vmatmul.mubr.bf16.gmra.mrb[12].mxu1 %v3008_v24  ;;  %v2995_v24 = vcombine.low %v1521_v32, %v1522_v31  ;;  %v1608_v61 = vor.u32 %v1607_v10, %v1603_v57  ;;  %v1477_v59 = vshll.u32 %v4386_v21, 16  ;;  %v1614_v22 = vrot.slane %v1612_v58, 1  ;;  %v1263_v31 = vld [vmem:[#allocation2 + $0x10] sm:$0xe]  ;;  %v3580_v32 = vld [vmem:[%s4480_s3 + $0x228] sm:$0xff]  }
 0x202   : > { %2520 = vmatprep.mubr.bf16.mxu1 %v2986_v46  ;;  %v1237_v46 = vld [vmem:[#allocation2 + $0x44] sm:$0x1]  ;;  %v1470_v47 = vshll.u32 %v2952_v7, 16  ;;  %v1610_v20 = vshrl.u32 %v2970_v0, 16  ;;  %v1523_v9 = vrot.slane %v2960_v2, 1  ;;  %v4409_v10 = vcombine.low %v4332_v23, %v1236_v44 }
 0x203   : > { %v3006_v28 = vcombine.low %v1601_v1, %v1608_v61  ;;  %v1479_v63 = vrot.slane %v1477_v59, 1  ;;  %v2963_v0 = vcombine.low %v1245_v42, %v1237_v46  ;;  %v1475_v52 = vshrl.u32 %v4386_v21, 16  ;;  %v1264_v23 = vld [vmem:[#allocation2 + $0x18] sm:$0xe]  ;;  %v1267_v58 = vld [vmem:[#allocation2 + $0x30] sm:$0xe] }
 0x204   : > { %v1615_v55 = vor.u32 %v1614_v22, %v1610_v20  ;;  %v3005_v49 = vcombine.low %v4350_v48, %v4355_v62  ;;  %v2972_v1 = vcombine.low %v1263_v31, %v4291_v39  ;;  %v1468_v57 = vshrl.u32 %v2952_v7, 16  ;;  %v1268_v2 = vld [vmem:[#allocation2 + $0x38] sm:$0xe] }
 0x205   : > { %2586 = vmatmul.mubr.bf16.vlgmr.msra.gmra.mrb[24].mxu0 %v2987_v6  ;;  %v4403_v6 = vcombine.low %v4330_v25, %v1237_v46  ;;  %v1472_v25 = vrot.slane %v1470_v47, 1  ;;  %v1480_v21 = vor.u32 %v1479_v63, %v1475_v52  ;;  %v1484_v53 = vshll.u32 %v4409_v10, 16 }
 0x206   : > { %2593 = vmatprep.mubr.bf16.mxu0 %v2997_v45  ;;  %3308 = vmatpush3.bf16.msra.mxu0 %v4262_v4  ;;  %v2973_v62 = vcombine.low %v1264_v23, %v4306_v14  ;;  %v1647_v61 = vrot.slane %v2972_v1, 1  ;;  %v2976_v59 = vcombine.low %v1267_v58, %v4352_v50  ;;  %v3014_v46 = vcombine.low %v4370_v3, %v4363_v11 }
 0x207   : > { %3309 = vmatprep.subr.bf16.mxu0 %v3564_v29  ;;  %v1473_v48 = vor.u32 %v1472_v25, %v1468_v57  ;;  %v1489_v22 = vshrl.u32 %v4403_v6, 16  ;;  %v2977_v50 = vcombine.low %v1268_v2, %v4357_v30  ;;  %v1482_v20 = vshrl.u32 %v4409_v10, 16 }
 0x208   : > { %v1648_v14 = vrot.slane %v2973_v62, 1  ;;  %v4490_v10 = vcombine.low %v3710_v34, %v3707_v33  ;;  %v4492_v25 = vcombine.low %v3763_v13, %v3760_v12  ;;  %v4493_v52 = vcombine.low %v3774_v18, %v3771_v17 }
 0x209   : > { %2521 = vmatmul.mubr.bf16.vlgmr.msra.gmra.mrb[16].mxu1 %v2985_v40  ;;  %v1621_v40 = vrot.slane %v1619_v15, 1  ;;  %v2962_v15 = vcombine.low %v1244_v43, %v1236_v44  ;;  %v3003_v7 = vcombine.low %v1473_v48, %v1480_v21 }
 0x20a   : > { %3310 = vmatpush3.bf16.msra.mxu0 %v3564_v29  ;;  %3349 = vmatpush3.bf16.msra.mxu1 %v4262_v4  ;;  %v1524_v4 = vrot.slane %v2961_v36, 1  ;;  %v1266_v36 = vld [vmem:[#allocation2 + $0x28] sm:$0xe]  ;;  %v2989_v47 = vcombine.low %v1647_v61, %v1648_v14 }
 0x20b   : > { %2528 = vmatprep.mubr.bf16.mxu1 %v2995_v24  ;;  %3342 = vmatprep.subr.bf16.mxu1 %v3564_v29  ;;  %v1622_v45 = vor.u32 %v1621_v40, %v1617_v16  ;;  %v1525_v39 = vrot.slane %v2962_v15, 1  ;;  %v3584_v24 = vld [vmem:[%s4480_s3 + $0x230] sm:$0xff]   ;;  %v2975_v40 = vcombine.low %v1266_v36, %v4338_v19  ;;  %v1269_v19 = vld [vmem:[#allocation2 + $0x40] sm:$0xe] }
 0x20c   : > { %3311 = vmatprep.subr.bf16.mxu0 %v3568_v56  ;;  %v3004_v35 = vcombine.low %v1523_v9, %v1524_v4  ;;  %v3587_v4 = vld [vmem:[%s4480_s3 + $0x238] sm:$0xff]   ;;  %v1270_v9 = vld [vmem:[#allocation2 + $0x48] sm:$0xe]  ;;  %v2978_v30 = vcombine.low %v1269_v19, %v4372_v5 }
 0x20d   : > { %2594 = vmatmul.mubr.bf16.gmra.mrb[28].mxu0 %v2996_v60  ;;  %v1650_v3 = vrot.slane %v2975_v40, 1 }
 0x20e   : > { %2601 = vmatprep.mubr.bf16.mxu0 %v3006_v28  ;;  %3312 = vmatpush3.bf16.msra.mxu0 %v3568_v56  ;;  %v1265_v28 = vld [vmem:[#allocation2 + $0x20] sm:$0xe]  ;;  %v1653_v31 = vrot.slane %v2978_v30, 1 }
 0x20f   : > { %3350 = vmatpush3.bf16.msra.mxu1 %v3564_v29  ;;  %3313 = vmatprep.subr.bf16.mxu0 %v3571_v41  ;;  %v4489_v29 = vcombine.low %v4220_v26, %v4222_v51  ;;  %v1491_v26 = vshll.u32 %v4403_v6, 16  ;;  %v3015_v51 = vcombine.low %v1615_v55, %v1622_v45  ;;  %v2974_v44 = vcombine.low %v1265_v28, %v4323_v27 }
 0x210   : > { %3343 = vmatprep.subr.bf16.mxu1 %v3568_v56  ;;  %v1651_v6 = vrot.slane %v2976_v59, 1  ;;  %v2979_v55 = vcombine.low %v1270_v9, %v4367_v8 }
 0x211   : > { %2529 = vmatmul.mubr.bf16.gmra.mrb[20].mxu1 %v4489_v29  ;;  %v1493_v60 = vrot.slane %v1491_v26, 1  ;;  %v1649_v63 = vrot.slane %v2974_v44, 1  ;;  %v4491_v29 = vcombine.low %v3718_v38, %v3715_v37  ;;  %v2980_v37 = vld [vmem:[%s4481_s4] ss:$0 sm:$0xff] }
 0x212   : > { %3314 = vmatpush3.bf16.msra.mxu0 %v3571_v41  ;;  %2536 = vmatprep.mubr.bf16.mxu1 %v3004_v35  ;;  %v1654_v35 = vrot.slane %v2979_v55, 1 }
 0x213   : > { %3351 = vmatpush3.bf16.msra.mxu1 %v3568_v56  ;;  %3315 = vmatprep.subr.bf16.mxu0 %v3575_v54  ;;  %v1526_v56 = vrot.slane %v2963_v0, 1  ;;  %v1494_v42 = vor.u32 %v1493_v60, %v1489_v22  ;;  %v2998_v27 = vcombine.low %v1649_v63, %v1650_v3  ;;  %v2683_v0 = vld [vmem:[%s4482_s5] sm:$0x3] }
 0x214   : > { %3344 = vmatprep.subr.bf16.mxu1 %v3571_v41  ;;  %v3016_v8 = vcombine.low %v1653_v31, %v1654_v35  ;;  %v2708_v5 = vsel %vm934_vm0, %v2683_v0, 0 }
 0x215   : > { %2602 = vmatmul.mubr.bf16.gmra.mrb[32].mxu0 %v3005_v49  ;;  %v3013_v16 = vcombine.low %v1525_v39, %v1526_v56 }
 0x216   : > { %2609 = vmatprep.mubr.bf16.mxu0 %v3015_v51  ;;  %3316 = vmatpush3.bf16.msra.mxu0 %v3575_v54 }
 0x217   : > { %3352 = vmatpush3.bf16.msra.mxu1 %v3571_v41  ;;  %3317 = vmatprep.subr.bf16.mxu0 %v3580_v32  ;;  %v1486_v41 = vrot.slane %v1484_v53, 1 }
 0x218   : > { %3345 = vmatprep.subr.bf16.mxu1 %v3575_v54 }
 0x219   : > { %2537 = vmatmul.mubr.bf16.gmra.mrb[24].mxu1 %v3003_v7  ;;  %v1487_v11 = vor.u32 %v1486_v41, %v1482_v20 }
 0x21a   : > { %3318 = vmatpush3.bf16.msra.mxu0 %v3580_v32  ;;  %2544 = vmatprep.mubr.bf16.mxu1 %v3013_v16 }
 0x21b   : > { %3353 = vmatpush3.bf16.msra.mxu1 %v3575_v54  ;;  %3319 = vmatprep.subr.bf16.mxu0 %v3584_v24  ;;  %v1652_v54 = vrot.slane %v2977_v50, 1  ;;  %v3012_v45 = vcombine.low %v1487_v11, %v1494_v42 }
 0x21c   : > { %3346 = vmatprep.subr.bf16.mxu1 %v3580_v32 }
 0x21d   : > { %2610 = vmatmul.mubr.bf16.gmra.mrb[36].mxu0 %v3014_v46  ;;  %v3007_v43 = vcombine.low %v1651_v6, %v1652_v54 }
 0x21e   : > { %3320 = vmatpush3.bf16.msra.mxu0 %v3584_v24  ;;  %3323 = vmatprep.mubr.bf16.mxu0 %v2989_v47 }
 0x21f   : > { %3354 = vmatpush3.bf16.msra.mxu1 %v3580_v32  ;;  %3321 = vmatprep.subr.bf16.mxu0 %v3587_v4 }
 0x220   : > { %3347 = vmatprep.subr.bf16.mxu1 %v3584_v24 }
 0x221   : > { %2545 = vmatmul.mubr.bf16.gmra.mrb[28].mxu1 %v3012_v45 }
 0x222   : > { %3322 = vmatpush3.bf16.msra.mxu0 %v3587_v4  ;;  %3327 = vmatprep.mubr.bf16.mxu1 %v3007_v43 }
 0x223   : > { %3355 = vmatpush3.bf16.msra.mxu1 %v3584_v24 }
 0x224   : > { %3348 = vmatprep.subr.bf16.mxu1 %v3587_v4 }
 0x225   : > { %3324 = vmatmul.mubr.bf16.vlgmr.msra.gmra.mrb[40].mxu0 %v2998_v27 }
 0x227   : > { %3356 = vmatpush3.bf16.msra.mxu1 %v3587_v4 }
 0x228   : > { %3382 = vmatprep.subr.msk.bf16.mxu1 %vm934_vm0, %v2683_v0 }
 0x22a   : > { %3328 = vmatmul.mubr.bf16.vlgmr.msra.gmra.mrb[32].mxu1 %v3016_v8 }
 0x22b   : > { %3332 = vmatpush3.bf16.msra.mxu1 %v2708_v5  ;;  %3333 = vmatprep.mubr.msk.bf16.mxu1 %vm730_vm1, %v4490_v10 }
 0x232   : > { %3334 = vmatmul.mubr.msk.bf16.vlgmr.msra.gmra.mrb[36].mxu1 %vm730_vm1, %v4491_v29 }
 0x233   : > { %3337 = vmatprep.mubr.msk.bf16.mxu1 %vm730_vm1, %v4492_v25 }
 0x23a   : > { %3338 = vmatmul.mubr.msk.bf16.gmra.mrb[32].mxu1 %vm730_vm1, %v4493_v52 }
 0x288   : > { %v3172_v49 = vpop.f32.mrb[8].mxu0 }
 0x289   : > { %v3173_v32 = vpop.f32.mrb[9].mxu0 }
 0x28a   : > { %v3174_v33 = vadd.f32 %v3173_v32, %v3172_v49  ;;  %v3175_v34 = vpop.f32.mrb[10].mxu0 }
 0x28b   : > { %v3176_v15 = vpop.f32.mrb[11].mxu0 }
 0x28c   : > { %v3177_v23 = vadd.f32 %v3176_v15, %v3175_v34 }
 0x28e   : > { %v3132_v1 = vpop.f32.mrb[0].mxu1 }
 0x28f   : > { %v3133_v38 = vpop.f32.mrb[1].mxu1 }
 0x290   : > { %v3178_v12 = vpop.f32.mrb[12].mxu0  ;;  %v3134_v13 = vadd.f32 %v3133_v38, %v3132_v1  ;;  %v3135_v26 = vpop.f32.mrb[2].mxu1 }
 0x291   : > { %v3179_v51 = vpop.f32.mrb[13].mxu0  ;;  %v3136_v57 = vpop.f32.mrb[3].mxu1 }
 0x292   : > { %v3180_v17 = vadd.f32 %v3179_v51, %v3178_v12  ;;  %v3181_v18 = vpop.f32.mrb[14].mxu0  ;;  %v2393_v21 = vadd.f32 %v3134_v13, %v2980_v37  ;;  %v3137_v56 = vadd.f32 %v3136_v57, %v3135_v26 }
 0x293   : > { %v3182_v53 = vpop.f32.mrb[15].mxu0 }
 0x294   : > { %v3183_v48 = vadd.f32 %v3182_v53, %v3181_v18  ;;  %v2396_v62 = vadd.f32 %v3137_v56, %v2980_v37  ;;  %v2458_v58 = vadd.f32 %v3174_v33, %v2393_v21 }
 0x296   : > { %v3138_v39 = vpop.f32.mrb[4].mxu1  ;;  %v2461_v24 = vadd.f32 %v3177_v23, %v2396_v62 }
 0x297   : > { %v3139_v36 = vpop.f32.mrb[5].mxu1 }
 0x298   : > { %v3140_v7 = vadd.f32 %v3139_v36, %v3138_v39  ;;  %v3141_v61 = vpop.f32.mrb[6].mxu1 }
 0x299   : > { %v3142_v60 = vpop.f32.mrb[7].mxu1 }
 0x29a   : > { %v2401_v2 = vadd.f32 %v3140_v7, %v2980_v37  ;;  %v3143_v16 = vadd.f32 %v3142_v60, %v3141_v61 }
 0x29c   : > { %v2404_v59 = vadd.f32 %v3143_v16, %v2980_v37  ;;  %v2466_v28 = vadd.f32 %v3180_v17, %v2401_v2 }
 0x29e   : > { %v4464_v14 = vadd.f32 %v3183_v48, %v2404_v59 }
 0x2c8   : > { %v3184_v41 = vpop.f32.mrb[16].mxu0 }
 0x2c9   : > { %v3185_v22 = vpop.f32.mrb[17].mxu0 }
 0x2ca   : > { %v3186_v40 = vadd.f32 %v3185_v22, %v3184_v41  ;;  %v3187_v46 = vpop.f32.mrb[18].mxu0 }
 0x2cb   : > { %v3188_v4 = vpop.f32.mrb[19].mxu0 }
 0x2cc   : > { %v3189_v50 = vadd.f32 %v3188_v4, %v3187_v46  ;;  %v3144_v47 = vpop.f32.mrb[8].mxu1 }
 0x2cd   : > { %v3145_v20 = vpop.f32.mrb[9].mxu1 }
 0x2ce   : > { %v3146_v42 = vadd.f32 %v3145_v20, %v3144_v47  ;;  %v3147_v44 = vpop.f32.mrb[10].mxu1 }
 0x2cf   : > { %v3148_v19 = vpop.f32.mrb[11].mxu1 }
 0x2d0   : > { %v3190_v9 = vpop.f32.mrb[20].mxu0  ;;  %v2409_v6 = vadd.f32 %v3146_v42, %v2980_v37  ;;  %v3149_v11 = vadd.f32 %v3148_v19, %v3147_v44 }
 0x2d1   : > { %v3191_v3 = vpop.f32.mrb[21].mxu0 }
 0x2d2   : > { %v3192_v54 = vadd.f32 %v3191_v3, %v3190_v9  ;;  %v3193_v30 = vpop.f32.mrb[22].mxu0  ;;  %v2412_v55 = vadd.f32 %v3149_v11, %v2980_v37  ;;  %v2474_v63 = vadd.f32 %v3186_v40, %v2409_v6 }
 0x2d3   : > { %v3194_v45 = vpop.f32.mrb[23].mxu0 }
 0x2d4   : > { %v3195_v43 = vadd.f32 %v3194_v45, %v3193_v30  ;;  %v3150_v27 = vpop.f32.mrb[12].mxu1  ;;  %v2477_v31 = vadd.f32 %v3189_v50, %v2412_v55 }
 0x2d5   : > { %v3151_v35 = vpop.f32.mrb[13].mxu1 }
 0x2d6   : > { %v3152_v0 = vadd.f32 %v3151_v35, %v3150_v27  ;;  %v3153_v8 = vpop.f32.mrb[14].mxu1 }
 0x2d7   : > { %v3154_v5 = vpop.f32.mrb[15].mxu1 }
 0x2d8   : > { %v3252_v10 = vpop.f32.mrb[24].mxu0  ;;  %v2417_v29 = vadd.f32 %v3152_v0, %v2980_v37  ;;  %v3155_v25 = vadd.f32 %v3154_v5, %v3153_v8 }
 0x2d9   : > { %v3253_v52 = vpop.f32.mrb[25].mxu0 }
 0x2da   : > { %v3254_v49 = vadd.f32 %v3253_v52, %v3252_v10  ;;  %v3255_v32 = vpop.f32.mrb[26].mxu0  ;;  %v2420_v33 = vadd.f32 %v3155_v25, %v2980_v37  ;;  %v2482_v15 = vadd.f32 %v3192_v54, %v2417_v29 }
 0x2db   : > { %v3256_v34 = vpop.f32.mrb[27].mxu0 }
 0x2dc   : > { %v3257_v23 = vadd.f32 %v3256_v34, %v3255_v32  ;;  %v3212_v1 = vpop.f32.mrb[16].mxu1  ;;  %v2485_v38 = vadd.f32 %v3195_v43, %v2420_v33 }
 0x2dd   : > { %v3213_v12 = vpop.f32.mrb[17].mxu1 }
 0x2de   : > { %v3214_v13 = vadd.f32 %v3213_v12, %v3212_v1  ;;  %v3215_v26 = vpop.f32.mrb[18].mxu1 }
 0x2df   : > { %v3216_v51 = vpop.f32.mrb[19].mxu1 }
 0x2e0   : > { %v3258_v57 = vpop.f32.mrb[28].mxu0  ;;  %v2523_v17 = vadd.f32 %v3214_v13, %v2458_v58  ;;  %v3217_v18 = vadd.f32 %v3216_v51, %v3215_v26 }
 0x2e1   : > { %v3259_v21 = vpop.f32.mrb[29].mxu0 }
 0x2e2   : > { %v3260_v56 = vadd.f32 %v3259_v21, %v3258_v57  ;;  %v3261_v53 = vpop.f32.mrb[30].mxu0  ;;  %v2526_v48 = vadd.f32 %v3217_v18, %v2461_v24  ;;  %v2588_v39 = vadd.f32 %v3254_v49, %v2523_v17  ;;  %v3089_v57 = vld [vmem:[%s4483_s6] ss:$0 sm:$0xff] }
 0x2e3   : > { %v3262_v62 = vpop.f32.mrb[31].mxu0 }
 0x2e4   : > { %v3263_v36 = vadd.f32 %v3262_v62, %v3261_v53  ;;  %v3218_v37 = vpop.f32.mrb[20].mxu1  ;;  %v2591_v7 = vadd.f32 %v3257_v23, %v2526_v48 }
 0x2e5   : > { %v3219_v61 = vpop.f32.mrb[21].mxu1 }
 0x2e6   : > { %v3220_v60 = vadd.f32 %v3219_v61, %v3218_v37  ;;  %v3221_v2 = vpop.f32.mrb[22].mxu1 }
 0x2e7   : > { %v3222_v16 = vpop.f32.mrb[23].mxu1 }
 0x2e8   : > { %v3264_v59 = vpop.f32.mrb[32].mxu0  ;;  %v2531_v41 = vadd.f32 %v3220_v60, %v2466_v28  ;;  %v3223_v22 = vadd.f32 %v3222_v16, %v3221_v2 }
 0x2e9   : > { %v3265_v40 = vpop.f32.mrb[33].mxu0 }
 0x2ea   : > { %v3266_v46 = vadd.f32 %v3265_v40, %v3264_v59  ;;  %v3267_v58 = vpop.f32.mrb[34].mxu0  ;;  %v2534_v4 = vadd.f32 %v3223_v22, %v4464_v14  ;;  %v2596_v47 = vadd.f32 %v3260_v56, %v2531_v41 }
 0x2eb   : > { %v3268_v50 = vpop.f32.mrb[35].mxu0 }
 0x2ec   : > { %v3269_v24 = vadd.f32 %v3268_v50, %v3267_v58  ;;  %v3224_v20 = vpop.f32.mrb[24].mxu1  ;;  %v2599_v42 = vadd.f32 %v3263_v36, %v2534_v4 }
 0x2ed   : > { %v3225_v44 = vpop.f32.mrb[25].mxu1 }
 0x2ee   : > { %v3226_v19 = vadd.f32 %v3225_v44, %v3224_v20  ;;  %v3227_v9 = vpop.f32.mrb[26].mxu1 }
 0x2ef   : > { %v3228_v6 = vpop.f32.mrb[27].mxu1 }
 0x2f0   : > { %v3270_v11 = vpop.f32.mrb[36].mxu0  ;;  %v2539_v3 = vadd.f32 %v3226_v19, %v2474_v63  ;;  %v3229_v54 = vadd.f32 %v3228_v6, %v3227_v9 }
 0x2f1   : > { %v3271_v30 = vpop.f32.mrb[37].mxu0 }
 0x2f2   : > { %v3272_v28 = vadd.f32 %v3271_v30, %v3270_v11  ;;  %v3273_v55 = vpop.f32.mrb[38].mxu0  ;;  %v2542_v45 = vadd.f32 %v3229_v54, %v2477_v31  ;;  %v2604_v27 = vadd.f32 %v3266_v46, %v2539_v3 }
 0x2f3   : > { %v3274_v43 = vpop.f32.mrb[39].mxu0 }
 0x2f4   : > { %v3275_v35 = vadd.f32 %v3274_v43, %v3273_v55  ;;  %v3230_v14 = vpop.f32.mrb[28].mxu1  ;;  %v2607_v0 = vadd.f32 %v3269_v24, %v2542_v45  ;;  %v3371_v59 = vadd.f32 %v3089_v57, %v2604_v27 }
 0x2f5   : > { %v3231_v8 = vpop.f32.mrb[29].mxu1 }
 0x2f6   : > { %v3232_v5 = vadd.f32 %v3231_v8, %v3230_v14  ;;  %v3233_v10 = vpop.f32.mrb[30].mxu1  ;;  %v3375_v4 = vadd.f32 %v3089_v57, %v2607_v0 }
 0x2f7   : > { %v3234_v29 = vpop.f32.mrb[31].mxu1 }
 0x2f8   : > { %v3325_v25 = vpop.f32.mrb[40].mxu0  ;;  %v2547_v52 = vadd.f32 %v3232_v5, %v2482_v15  ;;  %v3235_v49 = vadd.f32 %v3234_v29, %v3233_v10 }
 0x2f9   : > { %v2661_v32 = vadd.f32 %v3325_v25, %v2596_v47  ;;  %v2652_v63 = vpop.f32.mrb[41].mxu0 }
 0x2fa   : > { %v2653_v33 = vadd.f32 %v2652_v63, %v2588_v39  ;;  %v3326_v34 = vpop.f32.mrb[42].mxu0  ;;  %v2550_v23 = vadd.f32 %v3235_v49, %v2485_v38  ;;  %v2612_v12 = vadd.f32 %v3272_v28, %v2547_v52 }
 0x2fb   : > { %v2664_v1 = vadd.f32 %v3326_v34, %v2599_v42  ;;  %v2655_v31 = vpop.f32.mrb[43].mxu0 }
 0x2fc   : > { %v2656_v13 = vadd.f32 %v2655_v31, %v2591_v7  ;;  %v2615_v26 = vadd.f32 %v3275_v35, %v2550_v23  ;;  %v3369_v2 = vadd.f32 %v3089_v57, %v2612_v12 }
 0x2fd   : > { %v3364_v15 = vadd.f32 %v3089_v57, %v2664_v1 }
 0x2fe   : > { %v3367_v53 = vadd.f32 %v3089_v57, %v2656_v13  ;;  %v3373_v40 = vadd.f32 %v3089_v57, %v2615_v26 }
 0x305   : > { %v3335_v51 = vpop.f32.mrb[36].mxu1 }
 0x306   : > { %v3358_v17 = vadd.f32 %v3335_v51, %v2661_v32  ;;  %v2744_v18 = vpop.f32.mrb[37].mxu1 }
 0x307   : > { %v3361_v21 = vadd.f32 %v2744_v18, %v2653_v33  ;;  %v3336_v56 = vpop.f32.mrb[38].mxu1 }
 0x308   : > { %v3359_v48 = vadd.f32 %v3358_v17, %v3089_v57  ;;  %v3365_v62 = vadd.f32 %v3364_v15, %v3336_v56  ;;  %v2747_v38 = vpop.f32.mrb[39].mxu1 }
 0x309   : > { %v3362_v39 = vadd.f32 %v3361_v21, %v3089_v57  ;;  %v3368_v36 = vadd.f32 %v3367_v53, %v2747_v38 }
 0x30a   : > { %v2785_v37 = vmax.f32 %v3359_v48, 0.0  ;;  %v2786_v7 = vmax.f32 %v3365_v62, 0.0 }
 0x30b   : > { %v2783_v61 = vmax.f32 %v3362_v39, 0.0  ;;  %v2784_v60 = vmax.f32 %v3368_v36, 0.0 }
 0x30c   : > { %2793 = vst [vmem:[%s278_s8 + $0x10] sm:$0xff] %v2785_v37  ;;  %2794 = vst [vmem:[%s278_s8 + $0x18] sm:$0xff] %v2786_v7 }
 0x30d   : > { %2791 = vst [vmem:[%s278_s8] sm:$0xff] %v2783_v61  ;;  %2792 = vst [vmem:[%s278_s8 + $0x8] sm:$0xff] %v2784_v60  ;;  %v3339_v16 = vpop.f32.mrb[32].mxu1 }
 0x30e   : > { %v3370_v41 = vadd.f32 %v3369_v2, %v3339_v16  ;;  %v2760_v22 = vpop.f32.mrb[33].mxu1 }
 0x30f   : > { %v3372_v46 = vadd.f32 %v3371_v59, %v2760_v22  ;;  %v3340_v58 = vpop.f32.mrb[34].mxu1 }
 0x310   : > { %v2789_v50 = vmax.f32 %v3370_v41, 0.0  ;;  %v3374_v47 = vadd.f32 %v3373_v40, %v3340_v58  ;;  %v2763_v24 = vpop.f32.mrb[35].mxu1 }
 0x311   : > { %v2787_v20 = vmax.f32 %v3372_v46, 0.0  ;;  %v3376_v42 = vadd.f32 %v3375_v4, %v2763_v24 }
 0x312   : > { %2797 = vst [vmem:[%s278_s8 + $0x30] sm:$0xff] %v2789_v50  ;;  %v2790_v44 = vmax.f32 %v3374_v47, 0.0 }
 0x313   : > { %2795 = vst [vmem:[%s278_s8 + $0x20] sm:$0xff] %v2787_v20  ;;  %v2788_v19 = vmax.f32 %v3376_v42, 0.0 }
 0x314   : > { %2798 = vst [vmem:[%s278_s8 + $0x38] sm:$0xff] %v2790_v44 }
 0x315   : > { %2796 = vst [vmem:[%s278_s8 + $0x28] sm:$0xff] %v2788_v19 }
 0x316 PF: > { %s17_s24 = sadd.s32 1, %s3596_s24  }
 0x317   : > { %p14_p4 = scmp.ge.s32.totalorder %s17_s24, 4  }
 0x319   :  { %16 = sbr.rel (!%p14_p4) target bundleno = 1 (0x1), region = 80 }

</bundles_post_ra>
